<compile_context>
chip_gen: v7x
topology: tpu7x:2x2x1
jax: 0.10.0
libtpu: 0.0.40
codegen_flags: <defaults>
</compile_context>

<pallas_src>
import jax
import jax.numpy as jnp
from jax.experimental import pallas as pl
from jax.experimental.pallas import tpu as pltpu


def _leaky_relu(x, slope=0.2):
    return jnp.where(x > 0, x, slope * x)


def latent_generator_kernel(z_ref, w1_ref, b1_ref, w2_ref, b2_ref,
                            w3_ref, b3_ref, out_ref):
    """One batch tile of the 3-layer MLP.

    Weights arrive already in bf16 and are fed to the MXU directly
    (single-pass bf16 x bf16 -> f32 accumulation).  Biases, LeakyReLU and the
    accumulators stay f32; only the matmul operands are bf16.
    """
    z = z_ref[...].astype(jnp.bfloat16)
    h = jnp.dot(z, w1_ref[...], preferred_element_type=jnp.float32) + b1_ref[...]
    h = _leaky_relu(h)
    h = jnp.dot(h.astype(jnp.bfloat16), w2_ref[...],
                preferred_element_type=jnp.float32) + b2_ref[...]
    h = _leaky_relu(h)
    out = jnp.dot(h.astype(jnp.bfloat16), w3_ref[...],
                  preferred_element_type=jnp.float32) + b3_ref[...]
    out_ref[...] = out.astype(out_ref.dtype)


def _pick_batch_tile(batch):
    """Batch tile = multiple of 8 sublanes.

    Big tiles amortize the ~0.35 us per-grid-step overhead; when the batch is
    large enough we keep at least 2 tiles so the "parallel" grid axis can be
    sharded across both TensorCores on v7x.  Capped at 512 rows (working set
    at 512: z 64 KiB + h1 512 KiB + h2 1 MiB + out 256 KiB + ~400 KiB bf16
    weights -- far under the default scoped VMEM on v5e/v6e/v7x).
    """
    ceil8 = lambda n: -(-n // 8) * 8
    b8 = max(8, ceil8(batch))
    if b8 <= 16:            # tiny batch: one tile; splitting only adds overhead
        return b8
    return min(512, ceil8(-(-b8 // 2)))


def latent_generator_apply(z, params):
    """z: (B, dim//4) float32; params: bf16 weights (in, out) + f32 biases (1, out)."""
    w1, b1 = params["w1"], params["b1"]
    w2, b2 = params["w2"], params["b2"]
    w3, b3 = params["w3"], params["b3"]

    B, d_in = z.shape
    dim = w3.shape[1]

    tm = _pick_batch_tile(B)
    b_pad = -(-B // tm) * tm
    z_p = z if b_pad == B else jnp.zeros((b_pad, d_in), z.dtype).at[:B].set(z)
    grid = (b_pad // tm,)

    def batch_tile(i):      # z / out: walk the batch axis
        return (i, 0)

    def resident(i):        # weights / biases: constant block -> DMA'd once, stay in VMEM
        return (0, 0)

    flops = 2 * b_pad * (d_in * 256 + 256 * 512 + 512 * dim)
    bytes_accessed = ((w1.size + w2.size + w3.size) * 2        # bf16 weights, once
                      + (b1.size + b2.size + b3.size) * 4      # f32 biases, once
                      + b_pad * (d_in + dim) * 4)              # f32 z + out
    cost = pl.CostEstimate(flops=flops, transcendentals=0,
                           bytes_accessed=bytes_accessed)

    def build(single_buffer_weights):
        if single_buffer_weights:
            # Resident blocks never re-DMA; don't reserve a second buffer.
            res_spec = lambda shape: pl.BlockSpec(
                shape, resident, pipeline_mode=pl.Buffered(1))
        else:
            res_spec = lambda shape: pl.BlockSpec(shape, resident)

        in_specs = [
            pl.BlockSpec((tm, d_in), batch_tile),
            res_spec(w1.shape), res_spec(b1.shape),
            res_spec(w2.shape), res_spec(b2.shape),
            res_spec(w3.shape), res_spec(b3.shape),
        ]
        out_spec = pl.BlockSpec((tm, dim), batch_tile)

        return pl.pallas_call(
            latent_generator_kernel,
            out_shape=jax.ShapeDtypeStruct((b_pad, dim), jnp.float32),
            grid=grid,
            in_specs=in_specs,
            out_specs=out_spec,
            compiler_params=pltpu.CompilerParams(
                dimension_semantics=("parallel",)),
            cost_estimate=cost,
        )

    args = (z_p, w1, b1, w2, b2, w3, b3)
    try:
        out_p = build(True)(*args)
    except Exception:
        # pipeline_mode=pl.Buffered(1) unsupported on this jax version: fall back
        # to default double-buffering (weights are still only DMA'd once).
        out_p = build(False)(*args)

    return out_p[:B]


def latent_generator_forward(params, batch_size, key):
    """Mirrors LatentGenerator.forward(batch_size): draw z ~ N(0,1), run the MLP."""
    d_in = params["w1"].shape[0]
    # TODO(synk): for the tiny-batch production path, draw z in-kernel via
    # pltpu.prng_seed + pltpu.prng_random_bits (Box-Muller) to fuse out the
    # separate RNG op and the z DMA; kept as a plain XLA op here so the result
    # can be verified against a pure-JAX reference with the same z.
    z = jax.random.normal(key, (batch_size, d_in), dtype=jnp.float32)
    return latent_generator_apply(z, params)


def init_params(key, dim):
    """Deterministic init mimicking nn.Linear default (uniform +-1/sqrt(fan_in)).
    Weights stored already transposed to (in, out); biases as (1, out). f32 masters."""
    d_in = dim // 4
    sizes = [(d_in, 256), (256, 512), (512, dim)]
    params = {}
    for i, (fi, fo) in enumerate(sizes, start=1):
        key, kw, kb = jax.random.split(key, 3)
        bound = 1.0 / (fi ** 0.5)
        params[f"w{i}"] = jax.random.uniform(
            kw, (fi, fo), jnp.float32, minval=-bound, maxval=bound)
        params[f"b{i}"] = jax.random.uniform(
            kb, (1, fo), jnp.float32, minval=-bound, maxval=bound)
    return params


def prepare_params(params_f32):
    """One-time, off-the-hot-path cast of the weights to bf16 for the kernel."""
    out = dict(params_f32)
    for name in ("w1", "w2", "w3"):
        out[name] = params_f32[name].astype(jnp.bfloat16)
    return out


def reference_apply(z, params):
    """Pure-JAX reference kept numerically in sync with the kernel
    (bf16 x bf16 matmuls with f32 accumulation, f32 biases / LeakyReLU)."""
    def mm(x, w):
        return jnp.dot(x.astype(jnp.bfloat16), w,
                       preferred_element_type=jnp.float32)
    h = mm(z, params["w1"]) + params["b1"]
    h = jnp.where(h > 0, h, 0.2 * h)
    h = mm(h, params["w2"]) + params["b2"]
    h = jnp.where(h > 0, h, 0.2 * h)
    return mm(h, params["w3"]) + params["b3"]


if __name__ == "__main__":
    dim = 128          # LatentGenerator(dim=128)
    batch_size = 2

    key = jax.random.PRNGKey(0)
    key, kz, kz2, kp = jax.random.split(key, 4)

    params_f32 = init_params(kp, dim)
    params = prepare_params(params_f32)   # bf16 weight cast happens once, here

    # Module-style call: forward(batch_size) draws z internally.
    out = latent_generator_forward(params, batch_size, kz)
    out = jax.block_until_ready(out)
    assert out.shape == (batch_size, dim), out.shape

    # Verify against a pure-JAX reference using the same z / same bf16 weights.
    z = jax.random.normal(kz, (batch_size, dim // 4), dtype=jnp.float32)
    ref = reference_apply(z, params)
    assert jnp.allclose(out, ref, atol=1e-3, rtol=1e-3), "mismatch vs reference (B=2)"

    # Also exercise the multi-tile + padded-batch path (grid=2, padded rows sliced off).
    z2 = jax.random.normal(kz2, (70, dim // 4), dtype=jnp.float32)
    out2 = jax.block_until_ready(latent_generator_apply(z2, params))
    ref2 = reference_apply(z2, params)
    assert out2.shape == (70, dim), out2.shape
    assert jnp.allclose(out2, ref2, atol=1e-3, rtol=1e-3), "mismatch vs reference (B=70)"

    print("KERNEL_OK")
</pallas_src>

<mosaic_0001>
module attributes {stable_mosaic.version = 11 : i64} {
  func.func @latent_generator_kernel(%arg0: i32, %arg1: memref<8x32xf32, #tpu.memory_space<vmem>>, %arg2: memref<32x256xbf16, #tpu.memory_space<vmem>>, %arg3: memref<1x256xf32, #tpu.memory_space<vmem>>, %arg4: memref<256x512xbf16, #tpu.memory_space<vmem>>, %arg5: memref<1x512xf32, #tpu.memory_space<vmem>>, %arg6: memref<512x128xbf16, #tpu.memory_space<vmem>>, %arg7: memref<1x128xf32, #tpu.memory_space<vmem>>, %arg8: memref<8x128xf32, #tpu.memory_space<vmem>>) attributes {dimension_semantics = [#tpu.dimension_semantics<parallel>], iteration_bounds = array<i64: 1>, scalar_prefetch = 0 : i64, scratch_operands = 0 : i64, tpu.core_type = #tpu.core_type<tc>, window_params = [{transform_indices = @transform_0, window_bounds = array<i64: 8, 32>}, {pipeline_mode = #tpu.pipeline_mode<synchronous>, transform_indices = @transform_1, window_bounds = array<i64: 32, 256>}, {pipeline_mode = #tpu.pipeline_mode<synchronous>, transform_indices = @transform_2, window_bounds = array<i64: 1, 256>}, {pipeline_mode = #tpu.pipeline_mode<synchronous>, transform_indices = @transform_3, window_bounds = array<i64: 256, 512>}, {pipeline_mode = #tpu.pipeline_mode<synchronous>, transform_indices = @transform_4, window_bounds = array<i64: 1, 512>}, {pipeline_mode = #tpu.pipeline_mode<synchronous>, transform_indices = @transform_5, window_bounds = array<i64: 512, 128>}, {pipeline_mode = #tpu.pipeline_mode<synchronous>, transform_indices = @transform_6, window_bounds = array<i64: 1, 128>}, {transform_indices = @transform_7, window_bounds = array<i64: 8, 128>}]} {
    %c0 = arith.constant 0 : index
    %c0_0 = arith.constant 0 : index
    %0 = vector.load %arg1[%c0, %c0_0] : memref<8x32xf32, #tpu.memory_space<vmem>>, vector<8x32xf32>
    %1 = arith.truncf %0 : vector<8x32xf32> to vector<8x32xbf16>
    %c0_1 = arith.constant 0 : index
    %c0_2 = arith.constant 0 : index
    %2 = vector.load %arg2[%c0_1, %c0_2] : memref<32x256xbf16, #tpu.memory_space<vmem>>, vector<32x256xbf16>
    %cst = arith.constant dense<0.000000e+00> : vector<8x256xf32>
    %3 = tpu.matmul %1, %2, %cst {dimension_numbers = #tpu.dot_dimension_numbers<[1], [0], [0], [1], [0, 0, 1, 1], [], []>} : vector<8x32xbf16>, vector<32x256xbf16>, vector<8x256xf32> -> vector<8x256xf32>
    %c0_3 = arith.constant 0 : index
    %c0_4 = arith.constant 0 : index
    %4 = vector.load %arg3[%c0_3, %c0_4] : memref<1x256xf32, #tpu.memory_space<vmem>>, vector<1x256xf32>
    %5 = vector.broadcast %4 : vector<1x256xf32> to vector<8x256xf32>
    %6 = arith.addf %3, %5 : vector<8x256xf32>
    %cst_5 = arith.constant 0.000000e+00 : f32
    %7 = vector.broadcast %cst_5 : f32 to vector<8x256xf32>
    %8 = arith.cmpf ogt, %6, %7 : vector<8x256xf32>
    %cst_6 = arith.constant 2.000000e-01 : f32
    %9 = vector.broadcast %cst_6 : f32 to vector<8x256xf32>
    %10 = arith.mulf %9, %6 : vector<8x256xf32>
    %11 = arith.select %8, %6, %10 : vector<8x256xi1>, vector<8x256xf32>
    %12 = arith.truncf %11 : vector<8x256xf32> to vector<8x256xbf16>
    %c0_7 = arith.constant 0 : index
    %c0_8 = arith.constant 0 : index
    %13 = vector.load %arg4[%c0_7, %c0_8] : memref<256x512xbf16, #tpu.memory_space<vmem>>, vector<256x512xbf16>
    %cst_9 = arith.constant dense<0.000000e+00> : vector<8x512xf32>
    %14 = tpu.matmul %12, %13, %cst_9 {dimension_numbers = #tpu.dot_dimension_numbers<[1], [0], [0], [1], [0, 0, 1, 1], [], []>} : vector<8x256xbf16>, vector<256x512xbf16>, vector<8x512xf32> -> vector<8x512xf32>
    %c0_10 = arith.constant 0 : index
    %c0_11 = arith.constant 0 : index
    %15 = vector.load %arg5[%c0_10, %c0_11] : memref<1x512xf32, #tpu.memory_space<vmem>>, vector<1x512xf32>
    %16 = vector.broadcast %15 : vector<1x512xf32> to vector<8x512xf32>
    %17 = arith.addf %14, %16 : vector<8x512xf32>
    %cst_12 = arith.constant 0.000000e+00 : f32
    %18 = vector.broadcast %cst_12 : f32 to vector<8x512xf32>
    %19 = arith.cmpf ogt, %17, %18 : vector<8x512xf32>
    %cst_13 = arith.constant 2.000000e-01 : f32
    %20 = vector.broadcast %cst_13 : f32 to vector<8x512xf32>
    %21 = arith.mulf %20, %17 : vector<8x512xf32>
    %22 = arith.select %19, %17, %21 : vector<8x512xi1>, vector<8x512xf32>
    %23 = arith.truncf %22 : vector<8x512xf32> to vector<8x512xbf16>
    %c0_14 = arith.constant 0 : index
    %c0_15 = arith.constant 0 : index
    %24 = vector.load %arg6[%c0_14, %c0_15] : memref<512x128xbf16, #tpu.memory_space<vmem>>, vector<512x128xbf16>
    %cst_16 = arith.constant dense<0.000000e+00> : vector<8x128xf32>
    %25 = tpu.matmul %23, %24, %cst_16 {dimension_numbers = #tpu.dot_dimension_numbers<[1], [0], [0], [1], [0, 0, 1, 1], [], []>} : vector<8x512xbf16>, vector<512x128xbf16>, vector<8x128xf32> -> vector<8x128xf32>
    %c0_17 = arith.constant 0 : index
    %c0_18 = arith.constant 0 : index
    %26 = vector.load %arg7[%c0_17, %c0_18] : memref<1x128xf32, #tpu.memory_space<vmem>>, vector<1x128xf32>
    %27 = vector.broadcast %26 : vector<1x128xf32> to vector<8x128xf32>
    %28 = arith.addf %25, %27 : vector<8x128xf32>
    %c0_19 = arith.constant 0 : index
    %c0_20 = arith.constant 0 : index
    %29 = vector.load %arg8[%c0_19, %c0_20] : memref<8x128xf32, #tpu.memory_space<vmem>>, vector<8x128xf32>
    tpu.vector_store %arg8[%c0_19, %c0_20], %28 {strides = array<i32>} : memref<8x128xf32, #tpu.memory_space<vmem>>, vector<8x128xf32>,
    return
  }
  func.func @transform_0(%arg0: i32) -> (i32, i32) {
    %c0_i32 = arith.constant 0 : i32
    %c0_i32_0 = arith.constant 0 : i32
    return %arg0, %c0_i32 : i32, i32
  }
  func.func @transform_1(%arg0: i32) -> (i32, i32) {
    %c0_i32 = arith.constant 0 : i32
    %c0_i32_0 = arith.constant 0 : i32
    %c0_i32_1 = arith.constant 0 : i32
    return %c0_i32, %c0_i32_0 : i32, i32
  }
  func.func @transform_2(%arg0: i32) -> (i32, i32) {
    %c0_i32 = arith.constant 0 : i32
    %c0_i32_0 = arith.constant 0 : i32
    %c0_i32_1 = arith.constant 0 : i32
    return %c0_i32, %c0_i32_0 : i32, i32
  }
  func.func @transform_3(%arg0: i32) -> (i32, i32) {
    %c0_i32 = arith.constant 0 : i32
    %c0_i32_0 = arith.constant 0 : i32
    %c0_i32_1 = arith.constant 0 : i32
    return %c0_i32, %c0_i32_0 : i32, i32
  }
  func.func @transform_4(%arg0: i32) -> (i32, i32) {
    %c0_i32 = arith.constant 0 : i32
    %c0_i32_0 = arith.constant 0 : i32
    %c0_i32_1 = arith.constant 0 : i32
    return %c0_i32, %c0_i32_0 : i32, i32
  }
  func.func @transform_5(%arg0: i32) -> (i32, i32) {
    %c0_i32 = arith.constant 0 : i32
    %c0_i32_0 = arith.constant 0 : i32
    %c0_i32_1 = arith.constant 0 : i32
    return %c0_i32, %c0_i32_0 : i32, i32
  }
  func.func @transform_6(%arg0: i32) -> (i32, i32) {
    %c0_i32 = arith.constant 0 : i32
    %c0_i32_0 = arith.constant 0 : i32
    %c0_i32_1 = arith.constant 0 : i32
    return %c0_i32, %c0_i32_0 : i32, i32
  }
  func.func @transform_7(%arg0: i32) -> (i32, i32) {
    %c0_i32 = arith.constant 0 : i32
    %c0_i32_0 = arith.constant 0 : i32
    return %arg0, %c0_i32 : i32, i32
  }
}

module attributes {stable_mosaic.version = 11 : i64} {
  func.func @latent_generator_kernel(%arg0: i32, %arg1: memref<8x32xf32, #tpu.memory_space<vmem>>, %arg2: memref<32x256xbf16, #tpu.memory_space<vmem>>, %arg3: memref<1x256xf32, #tpu.memory_space<vmem>>, %arg4: memref<256x512xbf16, #tpu.memory_space<vmem>>, %arg5: memref<1x512xf32, #tpu.memory_space<vmem>>, %arg6: memref<512x128xbf16, #tpu.memory_space<vmem>>, %arg7: memref<1x128xf32, #tpu.memory_space<vmem>>, %arg8: memref<8x128xf32, #tpu.memory_space<vmem>>) attributes {dimension_semantics = [#tpu.dimension_semantics<parallel>], iteration_bounds = array<i64: 1>, scalar_prefetch = 0 : i64, scratch_operands = 0 : i64, tpu.core_type = #tpu.core_type<tc>, window_params = [{transform_indices = @transform_0, window_bounds = array<i64: 8, 32>}, {pipeline_mode = #tpu.pipeline_mode<synchronous>, transform_indices = @transform_1, window_bounds = array<i64: 32, 256>}, {pipeline_mode = #tpu.pipeline_mode<synchronous>, transform_indices = @transform_2, window_bounds = array<i64: 1, 256>}, {pipeline_mode = #tpu.pipeline_mode<synchronous>, transform_indices = @transform_3, window_bounds = array<i64: 256, 512>}, {pipeline_mode = #tpu.pipeline_mode<synchronous>, transform_indices = @transform_4, window_bounds = array<i64: 1, 512>}, {pipeline_mode = #tpu.pipeline_mode<synchronous>, transform_indices = @transform_5, window_bounds = array<i64: 512, 128>}, {pipeline_mode = #tpu.pipeline_mode<synchronous>, transform_indices = @transform_6, window_bounds = array<i64: 1, 128>}, {transform_indices = @transform_7, window_bounds = array<i64: 8, 128>}]} {
    %c0 = arith.constant 0 : index
    %c0_0 = arith.constant 0 : index
    %0 = vector.load %arg1[%c0, %c0_0] : memref<8x32xf32, #tpu.memory_space<vmem>>, vector<8x32xf32>
    %1 = arith.truncf %0 : vector<8x32xf32> to vector<8x32xbf16>
    %c0_1 = arith.constant 0 : index
    %c0_2 = arith.constant 0 : index
    %2 = vector.load %arg2[%c0_1, %c0_2] : memref<32x256xbf16, #tpu.memory_space<vmem>>, vector<32x256xbf16>
    %cst = arith.constant dense<0.000000e+00> : vector<8x256xf32>
    %3 = tpu.matmul %1, %2, %cst {dimension_numbers = #tpu.dot_dimension_numbers<[1], [0], [0], [1], [0, 0, 1, 1], [], []>} : vector<8x32xbf16>, vector<32x256xbf16>, vector<8x256xf32> -> vector<8x256xf32>
    %c0_3 = arith.constant 0 : index
    %c0_4 = arith.constant 0 : index
    %4 = vector.load %arg3[%c0_3, %c0_4] : memref<1x256xf32, #tpu.memory_space<vmem>>, vector<1x256xf32>
    %5 = vector.broadcast %4 : vector<1x256xf32> to vector<8x256xf32>
    %6 = arith.addf %3, %5 : vector<8x256xf32>
    %cst_5 = arith.constant 0.000000e+00 : f32
    %7 = vector.broadcast %cst_5 : f32 to vector<8x256xf32>
    %8 = arith.cmpf ogt, %6, %7 : vector<8x256xf32>
    %cst_6 = arith.constant 2.000000e-01 : f32
    %9 = vector.broadcast %cst_6 : f32 to vector<8x256xf32>
    %10 = arith.mulf %9, %6 : vector<8x256xf32>
    %11 = arith.select %8, %6, %10 : vector<8x256xi1>, vector<8x256xf32>
    %12 = arith.truncf %11 : vector<8x256xf32> to vector<8x256xbf16>
    %c0_7 = arith.constant 0 : index
    %c0_8 = arith.constant 0 : index
    %13 = vector.load %arg4[%c0_7, %c0_8] : memref<256x512xbf16, #tpu.memory_space<vmem>>, vector<256x512xbf16>
    %cst_9 = arith.constant dense<0.000000e+00> : vector<8x512xf32>
    %14 = tpu.matmul %12, %13, %cst_9 {dimension_numbers = #tpu.dot_dimension_numbers<[1], [0], [0], [1], [0, 0, 1, 1], [], []>} : vector<8x256xbf16>, vector<256x512xbf16>, vector<8x512xf32> -> vector<8x512xf32>
    %c0_10 = arith.constant 0 : index
    %c0_11 = arith.constant 0 : index
    %15 = vector.load %arg5[%c0_10, %c0_11] : memref<1x512xf32, #tpu.memory_space<vmem>>, vector<1x512xf32>
    %16 = vector.broadcast %15 : vector<1x512xf32> to vector<8x512xf32>
    %17 = arith.addf %14, %16 : vector<8x512xf32>
    %cst_12 = arith.constant 0.000000e+00 : f32
    %18 = vector.broadcast %cst_12 : f32 to vector<8x512xf32>
    %19 = arith.cmpf ogt, %17, %18 : vector<8x512xf32>
    %cst_13 = arith.constant 2.000000e-01 : f32
    %20 = vector.broadcast %cst_13 : f32 to vector<8x512xf32>
    %21 = arith.mulf %20, %17 : vector<8x512xf32>
    %22 = arith.select %19, %17, %21 : vector<8x512xi1>, vector<8x512xf32>
    %23 = arith.truncf %22 : vector<8x512xf32> to vector<8x512xbf16>
    %c0_14 = arith.constant 0 : index
    %c0_15 = arith.constant 0 : index
    %24 = vector.load %arg6[%c0_14, %c0_15] : memref<512x128xbf16, #tpu.memory_space<vmem>>, vector<512x128xbf16>
    %cst_16 = arith.constant dense<0.000000e+00> : vector<8x128xf32>
    %25 = tpu.matmul %23, %24, %cst_16 {dimension_numbers = #tpu.dot_dimension_numbers<[1], [0], [0], [1], [0, 0, 1, 1], [], []>} : vector<8x512xbf16>, vector<512x128xbf16>, vector<8x128xf32> -> vector<8x128xf32>
    %c0_17 = arith.constant 0 : index
    %c0_18 = arith.constant 0 : index
    %26 = vector.load %arg7[%c0_17, %c0_18] : memref<1x128xf32, #tpu.memory_space<vmem>>, vector<1x128xf32>
    %27 = vector.broadcast %26 : vector<1x128xf32> to vector<8x128xf32>
    %28 = arith.addf %25, %27 : vector<8x128xf32>
    %c0_19 = arith.constant 0 : index
    %c0_20 = arith.constant 0 : index
    %29 = vector.load %arg8[%c0_19, %c0_20] : memref<8x128xf32, #tpu.memory_space<vmem>>, vector<8x128xf32>
    tpu.vector_store %arg8[%c0_19, %c0_20], %28 {strides = array<i32>} : memref<8x128xf32, #tpu.memory_space<vmem>>, vector<8x128xf32>,
    return
  }
  func.func @transform_0(%arg0: i32) -> (i32, i32) {
    %c0_i32 = arith.constant 0 : i32
    %c0_i32_0 = arith.constant 0 : i32
    return %arg0, %c0_i32 : i32, i32
  }
  func.func @transform_1(%arg0: i32) -> (i32, i32) {
    %c0_i32 = arith.constant 0 : i32
    %c0_i32_0 = arith.constant 0 : i32
    %c0_i32_1 = arith.constant 0 : i32
    return %c0_i32, %c0_i32_0 : i32, i32
  }
  func.func @transform_2(%arg0: i32) -> (i32, i32) {
    %c0_i32 = arith.constant 0 : i32
    %c0_i32_0 = arith.constant 0 : i32
    %c0_i32_1 = arith.constant 0 : i32
    return %c0_i32, %c0_i32_0 : i32, i32
  }
  func.func @transform_3(%arg0: i32) -> (i32, i32) {
    %c0_i32 = arith.constant 0 : i32
    %c0_i32_0 = arith.constant 0 : i32
    %c0_i32_1 = arith.constant 0 : i32
    return %c0_i32, %c0_i32_0 : i32, i32
  }
  func.func @transform_4(%arg0: i32) -> (i32, i32) {
    %c0_i32 = arith.constant 0 : i32
    %c0_i32_0 = arith.constant 0 : i32
    %c0_i32_1 = arith.constant 0 : i32
    return %c0_i32, %c0_i32_0 : i32, i32
  }
  func.func @transform_5(%arg0: i32) -> (i32, i32) {
    %c0_i32 = arith.constant 0 : i32
    %c0_i32_0 = arith.constant 0 : i32
    %c0_i32_1 = arith.constant 0 : i32
    return %c0_i32, %c0_i32_0 : i32, i32
  }
  func.func @transform_6(%arg0: i32) -> (i32, i32) {
    %c0_i32 = arith.constant 0 : i32
    %c0_i32_0 = arith.constant 0 : i32
    %c0_i32_1 = arith.constant 0 : i32
    return %c0_i32, %c0_i32_0 : i32, i32
  }
  func.func @transform_7(%arg0: i32) -> (i32, i32) {
    %c0_i32 = arith.constant 0 : i32
    %c0_i32_0 = arith.constant 0 : i32
    return %arg0, %c0_i32 : i32, i32
  }
}

</mosaic_0001>

<bundles_post_ra>
// kernel: tpu_custom_call.1
= control target key start
LH: loop header
LB: loop body
LE: loop exit
PB: predicated region body
PF: predicated region fallthrough
CT: control target
= control target key end

     0   :  { %12 = vsyncpa [#allocation3], 0  ;;  %s1582_s0 = inlined_call_operand.hbm [shape: f32[8,32], index: 0, kind: input, shape index: {}]   ;;  %s1583_s1 = inlined_call_operand.hbm [shape: bf16[32,256], index: 1, kind: input, shape index: {}]   ;;  %s1584_s2 = inlined_call_operand.vmem [shape: f32[1,256], index: 2, kind: input, shape index: {}]   ;;  %s1585_s3 = inlined_call_operand.hbm [shape: bf16[256,512], index: 3, kind: input, shape index: {}]   ;;  %s1586_s4 = inlined_call_operand.vmem [shape: f32[1,512], index: 4, kind: input, shape index: {}]   ;;  %s1587_s5 = inlined_call_operand.hbm [shape: bf16[512,128], index: 5, kind: input, shape index: {}]   ;;  %s1588_s6 = inlined_call_operand.vmem [shape: f32[1,128], index: 6, kind: input, shape index: {}]   ;;  %s1589_s7 = inlined_call_operand.hbm [shape: f32[8,128], index: 7, kind: output, shape index: {}]  }
   0x1   :  { %13 = vsyncpa [#allocation6], 0 }
   0x2   :  { %14 = vsyncpa [#allocation9], 0 }
   0x3   :  { %15 = vsyncpa [#allocation4], 0  ;;  %s1447_s24 = smov [#allocation5]   ;;  %s1329_s28 = scalar_lea.hbm %s1583_s1, 512 }
   0x4   :  { %s31_s25 = sshll.u32 %s1447_s24, 4  ;;  %p1330_p0 = scmp.ne.s32.totalorder %s1583_s1, %s1329_s28  ;;  %s32_s25 = int_to_ptr.vmem [resolvable:$true] %s31_s25 }
   0x5   :  { %p1333_p1 = scmp.lt.u32.totalorder %s1329_s28, %s1583_s1 }
   0x7   :  { %p1335_p2 = pnand %p1333_p1, %p1330_p0 }
   0x9   :  { %1338 = shalt.err (!%p1335_p2)
}
   0xa   :  { %s1339_s10 = scalar_lea.vmem %s32_s25, 512  ;;  %p1344_p4 = scmp.lt.s32.totalorder %s32_s25, %s32_s25 }
   0xb   :  { %p1340_p3 = scmp.ne.s32.totalorder %s32_s25, %s1339_s10  ;;  %p1345_p5 = scmp.lt.s32.totalorder %s1339_s10, %s1339_s10 }
   0xd   :  { %p1346_p6 = por %p1345_p5, %p1344_p4 }
   0xf   :  { %p1347_p7 = pnand %p1346_p6, %p1340_p3 }
  0x11   :  { %1350 = shalt.err (!%p1347_p7)
}
  0x12   :  { %s1448_s11 = smov 128   ;;  %s1449_s12 = smov 8  }
  0x13   :  { %37 = dma.hbm_to_vmem [thread:$0]  %s1583_s1, 512, %s32_s25, [#allocation6], %s1448_s11, %s1448_s11, %s1449_s12  }
  0x14   :  { %s1450_s15 = smov [#allocation2]   ;;  %s1451_s17 = smov [#allocation7]  }
  0x15   :  { %s22_s16 = sshll.u32 %s1450_s15, 4  ;;  %s45_s18 = sshll.u32 %s1451_s17, 4  ;;  %s23_s16 = int_to_ptr.vmem [resolvable:$true] %s22_s16  ;;  %s46_s18 = int_to_ptr.vmem [resolvable:$true] %s45_s18 }
  0x16   :  { %s1351_s21 = scalar_lea.hbm %s1582_s0, 128 }
  0x17   :  { %p1352_p8 = scmp.ne.s32.totalorder %s1582_s0, %s1351_s21  ;;  %p1355_p9 = scmp.lt.u32.totalorder %s1351_s21, %s1582_s0 }
  0x19   :  { %p1357_p10 = pnand %p1355_p9, %p1352_p8 }
  0x1b   :  { %1360 = shalt.err (!%p1357_p10)
}
  0x1c   :  { %s1361_s1 = scalar_lea.vmem %s23_s16, 128  ;;  %p1366_p12 = scmp.lt.s32.totalorder %s23_s16, %s23_s16 }
  0x1d   :  { %p1362_p11 = scmp.ne.s32.totalorder %s23_s16, %s1361_s1  ;;  %p1367_p13 = scmp.lt.s32.totalorder %s1361_s1, %s1361_s1 }
  0x1f   :  { %p1368_p0 = por %p1367_p13, %p1366_p12 }
  0x21   :  { %p1369_p1 = pnand %p1368_p0, %p1362_p11 }
  0x23   :  { %1372 = shalt.err (!%p1369_p1)
}
  0x24   :  { %25 = dma.hbm_to_vmem [thread:$0]  %s1582_s0, 128, %s23_s16, [#allocation3]  }
  0x25   :  { %s1373_s30 = scalar_lea.hbm %s1585_s3, 8192 }
  0x26   :  { %p1374_p2 = scmp.ne.s32.totalorder %s1585_s3, %s1373_s30  ;;  %p1377_p3 = scmp.lt.u32.totalorder %s1373_s30, %s1585_s3 }
  0x28   :  { %p1379_p4 = pnand %p1377_p3, %p1374_p2 }
  0x2a   :  { %1382 = shalt.err (!%p1379_p4)
}
  0x2b   :  { %s1383_s12 = scalar_lea.vmem %s46_s18, 8192  ;;  %p1388_p6 = scmp.lt.s32.totalorder %s46_s18, %s46_s18 }
  0x2c   :  { %p1384_p5 = scmp.ne.s32.totalorder %s46_s18, %s1383_s12  ;;  %p1389_p7 = scmp.lt.s32.totalorder %s1383_s12, %s1383_s12 }
  0x2e   :  { %p1390_p8 = por %p1389_p7, %p1388_p6 }
  0x30   :  { %p1391_p9 = pnand %p1390_p8, %p1384_p5 }
  0x32   :  { %1394 = shalt.err (!%p1391_p9)
}
  0x33   :  { %s1452_s0 = smov 256   ;;  %s1453_s13 = smov 16  }
  0x34   :  { %51 = dma.hbm_to_vmem [thread:$0]  %s1585_s3, 8192, %s46_s18, [#allocation6], %s1452_s0, %s1452_s0, %s1453_s13  }
  0x35   :  { %s1454_s16 = smov [#allocation8]   ;;  %s1395_s21 = scalar_lea.hbm %s1587_s5, 4096 }
  0x36   :  { %s59_s17 = sshll.u32 %s1454_s16, 4  ;;  %p1396_p10 = scmp.ne.s32.totalorder %s1587_s5, %s1395_s21  ;;  %s60_s17 = int_to_ptr.vmem [resolvable:$true] %s59_s17 }
  0x37   :  { %p1399_p11 = scmp.lt.u32.totalorder %s1395_s21, %s1587_s5 }
  0x39   :  { %p1401_p12 = pnand %p1399_p11, %p1396_p10 }
  0x3b   :  { %1404 = shalt.err (!%p1401_p12)
}
  0x3c   :  { %s1405_s1 = scalar_lea.vmem %s60_s17, 4096  ;;  %p1410_p0 = scmp.lt.s32.totalorder %s60_s17, %s60_s17 }
  0x3d   :  { %p1406_p13 = scmp.ne.s32.totalorder %s60_s17, %s1405_s1  ;;  %p1411_p1 = scmp.lt.s32.totalorder %s1405_s1, %s1405_s1 }
  0x3f   :  { %p1412_p2 = por %p1411_p1, %p1410_p0 }
  0x41   :  { %p1413_p3 = pnand %p1412_p2, %p1406_p13 }
  0x43   :  { %1416 = shalt.err (!%p1413_p3)
}
  0x44   :  { %s1455_s3 = smov 64   ;;  %s1456_s18 = smov 4  }
  0x45   :  { %65 = dma.hbm_to_vmem [thread:$0]  %s1587_s5, 4096, %s60_s17, [#allocation9], %s1455_s3, %s1455_s3, %s1456_s18  }
  0x46   :  { %1439 = dma.done.wait [#allocation3], 128  }
  0x47   :  { %1440 = vsyncadd [#allocation3], 4294967168 }
  0x48   :  { %1441 = dma.done.wait [#allocation6], 8704  }
  0x49   :  { %1442 = vsyncadd [#allocation6], 4294958592 }
  0x4a   :  { %1443 = dma.done.wait [#allocation9], 4096  }
  0x4b   :  { %1444 = vsyncadd [#allocation9], 4294963200  ;;  %v1457_v0 = vmov 0   ;;  %v1195_v1 = vld [vmem:[#allocation5 + $0x4] ss:$8 sps:$4 sm:$0xff]   ;;  %v81_v5 = vld [vmem:[#allocation2] sm:$0xff] }
  0x4c   :  { %155 = vmatprep.mubr.bf16.mxu0 %v1457_v0  ;;  %v1197_v2 = vld [vmem:[#allocation5] ss:$8 sps:$4 sm:$0xff]   ;;  %123 = vmatprep.subr.bf16.mxu0 %v1195_v1  ;;  %v1198_v3 = vld [vmem:[#allocation5 + $0x14] ss:$8 sps:$4 sm:$0xff]   ;;  %v1200_v4 = vld [vmem:[#allocation5 + $0x10] ss:$8 sps:$4 sm:$0xff]   ;;  %v82_v9 = vpack.c.bf16 %v81_v5, %v81_v5 }
  0x4d   :  { %124 = vmatpush1.bf16.msra.mxu0 %v1197_v2  ;;  %v1201_v6 = vld [vmem:[#allocation7 + $0x4] ss:$16 sps:$4 sm:$0xff]   ;;  %v1205_v7 = vld [vmem:[#allocation7 + $0xc] ss:$16 sps:$4 sm:$0xff]   ;;  %v1206_v8 = vld [vmem:[#allocation7] ss:$16 sps:$4 sm:$0xff]  }
  0x4e   :  { %125 = vmatprep.subr.bf16.mxu0 %v1198_v3  ;;  %578 = vmatprep.subr.bf16.mxu1 %v1201_v6  ;;  %v1207_v10 = vld [vmem:[#allocation7 + $0x24] ss:$16 sps:$4 sm:$0xff]   ;;  %vm119_vm0 = vcmask 261120   ;;  %v1203_v11 = vld [vmem:[#allocation7 + $0x8] ss:$16 sps:$4 sm:$0xff]   ;;  %s1458_s8 = smov [#allocation10]  }
  0x4f   :  { %579 = vmatpush1.bf16.msra.mxu1 %v1206_v8  ;;  %v1211_v12 = vld [vmem:[#allocation7 + $0x2c] ss:$16 sps:$4 sm:$0xff]   ;;  %v1212_v13 = vld [vmem:[#allocation7 + $0x20] ss:$16 sps:$4 sm:$0xff]   ;;  %v1213_v14 = vld [vmem:[#allocation7 + $0x44] ss:$16 sps:$4 sm:$0xff]  }
  0x50   :  { %580 = vmatprep.subr.bf16.mxu1 %v1207_v10  ;;  %v1209_v15 = vld [vmem:[#allocation7 + $0x28] ss:$16 sps:$4 sm:$0xff]   ;;  %v1217_v16 = vld [vmem:[#allocation7 + $0x4c] ss:$16 sps:$4 sm:$0xff]   ;;  %v1218_v17 = vld [vmem:[#allocation7 + $0x40] ss:$16 sps:$4 sm:$0xff]  }
  0x51   :  { %126 = vmatpush1.bf16.msra.mxu0 %v1200_v4  ;;  %v1219_v18 = vld [vmem:[#allocation7 + $0x64] ss:$16 sps:$4 sm:$0xff]   ;;  %v1215_v19 = vld [vmem:[#allocation7 + $0x48] ss:$16 sps:$4 sm:$0xff]   ;;  %v1223_v20 = vld [vmem:[#allocation7 + $0x6c] ss:$16 sps:$4 sm:$0xff]  }
  0x52   :  { %619 = vmatprep.subr.bf16.mxu0 %v1205_v7  ;;  %v1224_v21 = vld [vmem:[#allocation7 + $0x60] ss:$16 sps:$4 sm:$0xff]   ;;  %v1225_v22 = vld [vmem:[#allocation7 + $0x84] ss:$16 sps:$4 sm:$0xff]   ;;  %v1221_v23 = vld [vmem:[#allocation7 + $0x68] ss:$16 sps:$4 sm:$0xff]  }
  0x53   :  { %581 = vmatpush1.bf16.msra.mxu1 %v1212_v13  ;;  %v1229_v24 = vld [vmem:[#allocation7 + $0x8c] ss:$16 sps:$4 sm:$0xff]   ;;  %v1230_v25 = vld [vmem:[#allocation7 + $0x80] ss:$16 sps:$4 sm:$0xff]   ;;  %v1231_v26 = vld [vmem:[#allocation7 + $0xa4] ss:$16 sps:$4 sm:$0xff]  }
  0x54   :  { %1041 = vmatmul.mubr.msk.bf16.vlgmr.msra.gmra.mrb[0].mxu0 %vm119_vm0, %v82_v9  ;;  %582 = vmatprep.subr.bf16.mxu1 %v1213_v14  ;;  %v1227_v27 = vld [vmem:[#allocation7 + $0x88] ss:$16 sps:$4 sm:$0xff]   ;;  %v1235_v28 = vld [vmem:[#allocation7 + $0xac] ss:$16 sps:$4 sm:$0xff]   ;;  %v1236_v29 = vld [vmem:[#allocation7 + $0xa0] ss:$16 sps:$4 sm:$0xff]   ;;  %v89_v9 = vlaneseq }
  0x55   :  { %620 = vmatpush1.bf16.msra.mxu0 %v1203_v11  ;;  %v1237_v30 = vld [vmem:[#allocation7 + $0xc4] ss:$16 sps:$4 sm:$0xff]   ;;  %v1233_v31 = vld [vmem:[#allocation7 + $0xa8] ss:$16 sps:$4 sm:$0xff]   ;;  %v1241_v32 = vld [vmem:[#allocation7 + $0xcc] ss:$16 sps:$4 sm:$0xff]  }
  0x56   :  { %621 = vmatprep.subr.bf16.mxu0 %v1211_v12  ;;  %v1242_v33 = vld [vmem:[#allocation7 + $0xc0] ss:$16 sps:$4 sm:$0xff]   ;;  %v1243_v34 = vld [vmem:[#allocation7 + $0xe4] ss:$16 sps:$4 sm:$0xff]   ;;  %v1239_v35 = vld [vmem:[#allocation7 + $0xc8] ss:$16 sps:$4 sm:$0xff]  }
  0x57   :  { %583 = vmatpush1.bf16.msra.mxu1 %v1218_v17  ;;  %v1247_v36 = vld [vmem:[#allocation7 + $0xec] ss:$16 sps:$4 sm:$0xff]   ;;  %v1248_v37 = vld [vmem:[#allocation7 + $0xe0] ss:$16 sps:$4 sm:$0xff]   ;;  %v1249_v38 = vld [vmem:[#allocation7 + $0x104] ss:$16 sps:$4 sm:$0xff]  }
  0x58   :  { %584 = vmatprep.subr.bf16.mxu1 %v1219_v18  ;;  %v1245_v39 = vld [vmem:[#allocation7 + $0xe8] ss:$16 sps:$4 sm:$0xff]   ;;  %v1253_v40 = vld [vmem:[#allocation7 + $0x10c] ss:$16 sps:$4 sm:$0xff]   ;;  %v1254_v41 = vld [vmem:[#allocation7 + $0x100] ss:$16 sps:$4 sm:$0xff]  }
  0x59   :  { %622 = vmatpush1.bf16.msra.mxu0 %v1209_v15  ;;  %v1255_v42 = vld [vmem:[#allocation7 + $0x124] ss:$16 sps:$4 sm:$0xff]   ;;  %v1251_v43 = vld [vmem:[#allocation7 + $0x108] ss:$16 sps:$4 sm:$0xff]   ;;  %v1260_v44 = vld [vmem:[#allocation7 + $0x120] ss:$16 sps:$4 sm:$0xff]  }
  0x5a   :  { %623 = vmatprep.subr.bf16.mxu0 %v1217_v16  ;;  %v1259_v45 = vld [vmem:[#allocation7 + $0x12c] ss:$16 sps:$4 sm:$0xff]   ;;  %v1261_v46 = vld [vmem:[#allocation7 + $0x144] ss:$16 sps:$4 sm:$0xff]   ;;  %v1257_v47 = vld [vmem:[#allocation7 + $0x128] ss:$16 sps:$4 sm:$0xff]  }
  0x5b   :  { %585 = vmatpush1.bf16.msra.mxu1 %v1224_v21  ;;  %v1266_v48 = vld [vmem:[#allocation7 + $0x140] ss:$16 sps:$4 sm:$0xff]   ;;  %v1265_v49 = vld [vmem:[#allocation7 + $0x14c] ss:$16 sps:$4 sm:$0xff]   ;;  %v1267_v50 = vld [vmem:[#allocation7 + $0x164] ss:$16 sps:$4 sm:$0xff]  }
  0x5c   :  { %586 = vmatprep.subr.bf16.mxu1 %v1225_v22  ;;  %v1263_v51 = vld [vmem:[#allocation7 + $0x148] ss:$16 sps:$4 sm:$0xff]   ;;  %v1272_v52 = vld [vmem:[#allocation7 + $0x160] ss:$16 sps:$4 sm:$0xff]   ;;  %v1271_v53 = vld [vmem:[#allocation7 + $0x16c] ss:$16 sps:$4 sm:$0xff]  }
  0x5d   :  { %624 = vmatpush1.bf16.msra.mxu0 %v1215_v19  ;;  %v1273_v54 = vld [vmem:[#allocation7 + $0x184] ss:$16 sps:$4 sm:$0xff]   ;;  %v1269_v55 = vld [vmem:[#allocation7 + $0x168] ss:$16 sps:$4 sm:$0xff]   ;;  %v1278_v56 = vld [vmem:[#allocation7 + $0x180] ss:$16 sps:$4 sm:$0xff]  }
  0x5e   :  { %625 = vmatprep.subr.bf16.mxu0 %v1223_v20  ;;  %v1277_v57 = vld [vmem:[#allocation7 + $0x18c] ss:$16 sps:$4 sm:$0xff]   ;;  %v1279_v58 = vld [vmem:[#allocation7 + $0x1a4] ss:$16 sps:$4 sm:$0xff]   ;;  %v1275_v59 = vld [vmem:[#allocation7 + $0x188] ss:$16 sps:$4 sm:$0xff]  }
  0x5f   :  { %587 = vmatpush1.bf16.msra.mxu1 %v1230_v25  ;;  %v1284_v60 = vld [vmem:[#allocation7 + $0x1a0] ss:$16 sps:$4 sm:$0xff]   ;;  %v1283_v61 = vld [vmem:[#allocation7 + $0x1ac] ss:$16 sps:$4 sm:$0xff]   ;;  %v1281_v62 = vld [vmem:[#allocation7 + $0x1a8] ss:$16 sps:$4 sm:$0xff]  }
  0x60   :  { %588 = vmatprep.subr.bf16.mxu1 %v1231_v26  ;;  %v1285_v63 = vld [vmem:[#allocation7 + $0x1c4] ss:$16 sps:$4 sm:$0xff]   ;;  %v1289_v0 = vld [vmem:[#allocation7 + $0x1cc] ss:$16 sps:$4 sm:$0xff]   ;;  %v1287_v1 = vld [vmem:[#allocation7 + $0x1c8] ss:$16 sps:$4 sm:$0xff]  }
  0x61   :  { %626 = vmatpush1.bf16.msra.mxu0 %v1221_v23  ;;  %v1290_v2 = vld [vmem:[#allocation7 + $0x1c0] ss:$16 sps:$4 sm:$0xff]   ;;  %v1291_v3 = vld [vmem:[#allocation7 + $0x1e4] ss:$16 sps:$4 sm:$0xff]   ;;  %v1293_v4 = vld [vmem:[#allocation7 + $0x1e8] ss:$16 sps:$4 sm:$0xff]  }
  0x62   :  { %627 = vmatprep.subr.bf16.mxu0 %v1229_v24  ;;  %v1295_v5 = vld [vmem:[#allocation7 + $0x1ec] ss:$16 sps:$4 sm:$0xff]   ;;  %v1296_v6 = vld [vmem:[#allocation7 + $0x1e0] ss:$16 sps:$4 sm:$0xff]   ;;  %v1547_v10 = vshrl.u32 %v89_v9, 7  ;;  %s1026_s9 = sshll.u32 %s1458_s8, 4  ;;  %s1027_s9 = int_to_ptr.vmem [resolvable:$true] %s1026_s9 }
  0x63   :  { %589 = vmatpush1.bf16.msra.mxu1 %v1236_v29  ;;  %v1297_v7 = vld [vmem:[#allocation8 + $0x40] sm:$0xff]   ;;  %v87_v12 = vld [vmem:[%s1584_s2] sm:$0x3]  ;;  %s1417_s10 = scalar_lea.vmem %s1027_s9, 128  ;;  %p1422_p5 = scmp.lt.s32.totalorder %s1027_s9, %s1027_s9 }
  0x64   :  { %590 = vmatprep.subr.bf16.mxu1 %v1237_v30  ;;  %v1298_v8 = vld [vmem:[#allocation8 + $0xc0] sm:$0xff]   ;;  %v91_v11 = vsub.s32 0, %v1547_v10  ;;  %v95_v13 = vsub.s32 1, %v1547_v10  ;;  %v1301_v30 = vld [vmem:[#allocation8 + $0x48] sm:$0xff]   ;;  %p1418_p4 = scmp.ne.s32.totalorder %s1027_s9, %s1417_s10  ;;  %p1423_p6 = scmp.lt.s32.totalorder %s1417_s10, %s1417_s10 }
  0x65   :  { %628 = vmatpush1.bf16.msra.mxu0 %v1227_v27  ;;  %v1299_v27 = vld [vmem:[#allocation8] sm:$0xff]  }
  0x66   :  { %629 = vmatprep.subr.bf16.mxu0 %v1235_v28  ;;  %v92_v14 = vrot.slane %v87_v12, %v91_v11  ;;  %v96_v15 = vrot.slane %v87_v12, %v95_v13  ;;  %v1300_v28 = vld [vmem:[#allocation8 + $0x80] sm:$0xff]   ;;  %p1424_p7 = por %p1423_p6, %p1422_p5 }
  0x67   :  { %591 = vmatpush1.bf16.msra.mxu1 %v1242_v33  ;;  %v1304_v33 = vld [vmem:[#allocation8 + $0x88] sm:$0xff]  }
  0x68   :  { %592 = vmatprep.subr.bf16.mxu1 %v1243_v34  ;;  %v1305_v34 = vld [vmem:[#allocation8 + $0x50] sm:$0xff]   ;;  %p1425_p8 = pnand %p1424_p7, %p1418_p4 }
  0x69   :  { %630 = vmatpush1.bf16.msra.mxu0 %v1233_v31  ;;  %v1302_v31 = vld [vmem:[#allocation8 + $0xc8] sm:$0xff]  }
  0x6a   :  { %631 = vmatprep.subr.bf16.mxu0 %v1241_v32  ;;  %v1303_v32 = vld [vmem:[#allocation8 + $0x8] sm:$0xff]  }
  0x6b   :  { %593 = vmatpush1.bf16.msra.mxu1 %v1248_v37  ;;  %v1308_v37 = vld [vmem:[#allocation8 + $0x90] sm:$0xff]  }
  0x6c   :  { %594 = vmatprep.subr.bf16.mxu1 %v1249_v38  ;;  %v1309_v38 = vld [vmem:[#allocation8 + $0x58] sm:$0xff]  }
  0x6d   :  { %632 = vmatpush1.bf16.msra.mxu0 %v1239_v35  ;;  %v1306_v35 = vld [vmem:[#allocation8 + $0xd0] sm:$0xff]  }
  0x6e   :  { %633 = vmatprep.subr.bf16.mxu0 %v1247_v36  ;;  %v1307_v36 = vld [vmem:[#allocation8 + $0x10] sm:$0xff]  }
  0x6f   :  { %595 = vmatpush1.bf16.msra.mxu1 %v1254_v41  ;;  %v1312_v41 = vld [vmem:[#allocation8 + $0x98] sm:$0xff]  }
  0x70   :  { %596 = vmatprep.subr.bf16.mxu1 %v1255_v42  ;;  %v1313_v42 = vld [vmem:[#allocation8 + $0x60] sm:$0xff]  }
  0x71   :  { %634 = vmatpush1.bf16.msra.mxu0 %v1245_v39  ;;  %v1310_v39 = vld [vmem:[#allocation8 + $0xd8] sm:$0xff]  }
  0x72   :  { %635 = vmatprep.subr.bf16.mxu0 %v1253_v40  ;;  %v1311_v40 = vld [vmem:[#allocation8 + $0x18] sm:$0xff]  }
  0x73   :  { %597 = vmatpush1.bf16.msra.mxu1 %v1260_v44  ;;  %v1315_v44 = vld [vmem:[#allocation8 + $0x20] sm:$0xff]  }
  0x74   :  { %598 = vmatprep.subr.bf16.mxu1 %v1261_v46  ;;  %v1317_v46 = vld [vmem:[#allocation8 + $0x68] sm:$0xff]  }
  0x75   :  { %636 = vmatpush1.bf16.msra.mxu0 %v1251_v43  ;;  %v1314_v43 = vld [vmem:[#allocation8 + $0xe0] sm:$0xff]  }
  0x76   :  { %637 = vmatprep.subr.bf16.mxu0 %v1259_v45  ;;  %v1316_v45 = vld [vmem:[#allocation8 + $0xa0] sm:$0xff]  }
  0x77   :  { %599 = vmatpush1.bf16.msra.mxu1 %v1266_v48  ;;  %v1319_v48 = vld [vmem:[#allocation8 + $0x28] sm:$0xff]  }
  0x78   :  { %600 = vmatprep.subr.bf16.mxu1 %v1267_v50  ;;  %v1321_v50 = vld [vmem:[#allocation8 + $0x70] sm:$0xff]  }
  0x79   :  { %638 = vmatpush1.bf16.msra.mxu0 %v1257_v47  ;;  %v1318_v47 = vld [vmem:[#allocation8 + $0xe8] sm:$0xff]  }
  0x7a   :  { %639 = vmatprep.subr.bf16.mxu0 %v1265_v49  ;;  %v1320_v49 = vld [vmem:[#allocation8 + $0xa8] sm:$0xff]  }
  0x7b   :  { %601 = vmatpush1.bf16.msra.mxu1 %v1272_v52  ;;  %v1323_v52 = vld [vmem:[#allocation8 + $0x30] sm:$0xff]  }
  0x7c   :  { %602 = vmatprep.subr.bf16.mxu1 %v1273_v54  ;;  %v1325_v54 = vld [vmem:[#allocation8 + $0x78] sm:$0xff]  }
  0x7d   :  { %640 = vmatpush1.bf16.msra.mxu0 %v1263_v51  ;;  %v1322_v51 = vld [vmem:[#allocation8 + $0xf0] sm:$0xff]  }
  0x7e   :  { %641 = vmatprep.subr.bf16.mxu0 %v1271_v53  ;;  %v1324_v53 = vld [vmem:[#allocation8 + $0xb0] sm:$0xff]  }
  0x7f   :  { %603 = vmatpush1.bf16.msra.mxu1 %v1278_v56  ;;  %v1327_v56 = vld [vmem:[#allocation8 + $0x38] sm:$0xff]  }
  0x80   :  { %604 = vmatprep.subr.bf16.mxu1 %v1279_v58  ;;  %v248_v58 = vsub.s32 2, %v1547_v10 }
  0x81   :  { %642 = vmatpush1.bf16.msra.mxu0 %v1269_v55  ;;  %v1326_v55 = vld [vmem:[#allocation8 + $0xf8] sm:$0xff]  }
  0x82   :  { %643 = vmatprep.subr.bf16.mxu0 %v1277_v57  ;;  %v1328_v57 = vld [vmem:[#allocation8 + $0xb8] sm:$0xff]  }
  0x83   :  { %605 = vmatpush1.bf16.msra.mxu1 %v1284_v60  ;;  %v252_v60 = vsub.s32 3, %v1547_v10 }
  0x84   :  { %606 = vmatprep.subr.bf16.mxu1 %v1285_v63 }
  0x85   :  { %644 = vmatpush1.bf16.msra.mxu0 %v1275_v59  ;;  %v236_v59 = vld [vmem:[%s1586_s4] sm:$0xf] }
  0x86   :  { %645 = vmatprep.subr.bf16.mxu0 %v1283_v61  ;;  %v241_v61 = vrot.slane %v236_v59, %v91_v11  ;;  %v245_v63 = vrot.slane %v236_v59, %v95_v13 }
  0x87   :  { %607 = vmatpush1.bf16.msra.mxu1 %v1290_v2 }
  0x88   :  { %608 = vmatprep.subr.bf16.mxu1 %v1291_v3 }
  0x89   :  { %646 = vmatpush1.bf16.msra.mxu0 %v1281_v62  ;;  %v249_v62 = vrot.slane %v236_v59, %v248_v58 }
  0x8a   :  { %647 = vmatprep.subr.bf16.mxu0 %v1289_v0  ;;  %v253_v0 = vrot.slane %v236_v59, %v252_v60 }
  0x8b   :  { %609 = vmatpush1.bf16.msra.mxu1 %v1296_v6 }
  0x8c   :  { %1139 = vmatprep.subr.bf16.mxu1 %v1297_v7 }
  0x8d   :  { %648 = vmatpush1.bf16.msra.mxu0 %v1287_v1 }
  0x8e   :  { %649 = vmatprep.subr.bf16.mxu0 %v1295_v5 }
  0x91   :  { %650 = vmatpush1.bf16.msra.mxu0 %v1293_v4 }
  0x92   :  { %1161 = vmatprep.subr.bf16.mxu0 %v1298_v8 }
 0x127   :  { %v157_v16 = vpop.f32.mrb[0].mxu0 }
 0x128   :  { %v158_v17 = vadd.f32 %v157_v16, %v92_v14  ;;  %v159_v18 = vpop.f32.mrb[1].mxu0 }
 0x129   :  { %v160_v19 = vadd.f32 %v159_v18, %v96_v15  ;;  %v161_v20 = vpop.f32.mrb[2].mxu0 }
 0x12a   :  { %vm164_vm1 = vcmp.gt.f32.partialorder %v158_v17, 0.0  ;;  %v166_v21 = vmul.f32 0.2, %v158_v17  ;;  %v162_v22 = vpop.f32.mrb[3].mxu0 }
 0x12b   :  { %v167_v23 = vmul.f32 0.2, %v160_v19  ;;  %vm165_vm2 = vcmp.gt.f32.partialorder %v160_v19, 0.0 }
 0x12c   :  { %v168_v24 = vsel %vm164_vm1, %v158_v17, %v166_v21 }
 0x12d   :  { %v169_v25 = vsel %vm165_vm2, %v160_v19, %v167_v23  ;;  %v170_v29 = vpack.c.bf16 %v168_v24, %v168_v24 }
 0x12e   :  { %v171_v26 = vpack.c.bf16 %v169_v25, %v169_v25 }
 0x130   :  { %610 = vmatprep.mubr.bf16.mxu1 %v171_v26  ;;  %651 = vmatprep.mubr.bf16.mxu0 %v171_v26 }
 0x131   :  { %611 = vmatmul.mubr.bf16.vlgmr.msra.gmra.mrb[0].mxu1 %v170_v29  ;;  %652 = vmatmul.mubr.bf16.vlgmr.msra.gmra.mrb[4].mxu0 %v170_v29 }
 0x132   :  { %1140 = vmatpush3.bf16.msra.mxu1 %v1299_v27  ;;  %1162 = vmatpush3.bf16.msra.mxu0 %v1300_v28  ;;  %v1106_v27 = vld [vmem:[%s1588_s6] ss:$0 sm:$0xff] }
 0x133   :  { %1141 = vmatprep.subr.bf16.mxu1 %v1301_v30  ;;  %1163 = vmatprep.subr.bf16.mxu0 %v1302_v31 }
 0x136   :  { %1142 = vmatpush3.bf16.msra.mxu1 %v1303_v32  ;;  %1164 = vmatpush3.bf16.msra.mxu0 %v1304_v33 }
 0x137   :  { %1143 = vmatprep.subr.bf16.mxu1 %v1305_v34  ;;  %1165 = vmatprep.subr.bf16.mxu0 %v1306_v35 }
 0x13a   :  { %1144 = vmatpush3.bf16.msra.mxu1 %v1307_v36  ;;  %1166 = vmatpush3.bf16.msra.mxu0 %v1308_v37 }
 0x13b   :  { %1145 = vmatprep.subr.bf16.mxu1 %v1309_v38  ;;  %1167 = vmatprep.subr.bf16.mxu0 %v1310_v39 }
 0x13e   :  { %1146 = vmatpush3.bf16.msra.mxu1 %v1311_v40  ;;  %1168 = vmatpush3.bf16.msra.mxu0 %v1312_v41 }
 0x13f   :  { %1147 = vmatprep.subr.bf16.mxu1 %v1313_v42  ;;  %1169 = vmatprep.subr.bf16.mxu0 %v1314_v43 }
 0x142   :  { %1148 = vmatpush3.bf16.msra.mxu1 %v1315_v44  ;;  %1170 = vmatpush3.bf16.msra.mxu0 %v1316_v45 }
 0x143   :  { %1149 = vmatprep.subr.bf16.mxu1 %v1317_v46  ;;  %1171 = vmatprep.subr.bf16.mxu0 %v1318_v47 }
 0x146   :  { %1150 = vmatpush3.bf16.msra.mxu1 %v1319_v48  ;;  %1172 = vmatpush3.bf16.msra.mxu0 %v1320_v49 }
 0x147   :  { %1151 = vmatprep.subr.bf16.mxu1 %v1321_v50  ;;  %1173 = vmatprep.subr.bf16.mxu0 %v1322_v51 }
 0x14a   :  { %1152 = vmatpush3.bf16.msra.mxu1 %v1323_v52  ;;  %1174 = vmatpush3.bf16.msra.mxu0 %v1324_v53 }
 0x14b   :  { %1153 = vmatprep.subr.bf16.mxu1 %v1325_v54  ;;  %1175 = vmatprep.subr.bf16.mxu0 %v1326_v55 }
 0x14e   :  { %1154 = vmatpush3.bf16.msra.mxu1 %v1327_v56  ;;  %1176 = vmatpush3.bf16.msra.mxu0 %v1328_v57 }
 0x204   :  { %v612_v1 = vpop.f32.mrb[0].mxu1  ;;  %v653_v2 = vpop.f32.mrb[4].mxu0 }
 0x205   :  { %v613_v3 = vadd.f32 %v612_v1, %v241_v61  ;;  %v654_v4 = vadd.f32 %v653_v2, %v249_v62  ;;  %v614_v5 = vpop.f32.mrb[1].mxu1  ;;  %v655_v6 = vpop.f32.mrb[5].mxu0 }
 0x206   :  { %v615_v7 = vadd.f32 %v614_v5, %v245_v63  ;;  %v656_v8 = vadd.f32 %v655_v6, %v253_v0  ;;  %v616_v9 = vpop.f32.mrb[2].mxu1  ;;  %v657_v12 = vpop.f32.mrb[6].mxu0 }
 0x207   :  { %vm660_vm3 = vcmp.gt.f32.partialorder %v613_v3, 0.0  ;;  %v664_v14 = vmul.f32 0.2, %v613_v3  ;;  %vm662_vm4 = vcmp.gt.f32.partialorder %v654_v4, 0.0  ;;  %v666_v15 = vmul.f32 0.2, %v654_v4 }
 0x208   :  { %vm661_vm5 = vcmp.gt.f32.partialorder %v615_v7, 0.0  ;;  %v665_v11 = vmul.f32 0.2, %v615_v7  ;;  %vm663_vm6 = vcmp.gt.f32.partialorder %v656_v8, 0.0  ;;  %v667_v10 = vmul.f32 0.2, %v656_v8 }
 0x209   :  { %v668_v13 = vsel %vm660_vm3, %v613_v3, %v664_v14  ;;  %v670_v16 = vsel %vm662_vm4, %v654_v4, %v666_v15  ;;  %v617_v17 = vpop.f32.mrb[3].mxu1  ;;  %v658_v18 = vpop.f32.mrb[7].mxu0 }
 0x20a   :  { %v669_v19 = vsel %vm661_vm5, %v615_v7, %v665_v11  ;;  %v671_v20 = vsel %vm663_vm6, %v656_v8, %v667_v10  ;;  %v672_v23 = vpack.c.bf16 %v668_v13, %v668_v13  ;;  %v674_v24 = vpack.c.bf16 %v670_v16, %v670_v16 }
 0x20b   :  { %v673_v21 = vpack.c.bf16 %v669_v19, %v669_v19  ;;  %v675_v22 = vpack.c.bf16 %v671_v20, %v671_v20 }
 0x20d   :  { %971 = vmatprep.mubr.bf16.mxu1 %v673_v21  ;;  %1011 = vmatprep.mubr.bf16.mxu0 %v675_v22 }
 0x20e   :  { %972 = vmatmul.mubr.bf16.vlgmr.msra.gmra.mrb[4].mxu1 %v672_v23  ;;  %1012 = vmatmul.mubr.bf16.vlgmr.msra.gmra.mrb[8].mxu0 %v674_v24 }
 0x2e1   :  { %v1155_v25 = vpop.f32.mrb[4].mxu1  ;;  %v1177_v26 = vpop.f32.mrb[8].mxu0 }
 0x2e2   :  { %v1156_v28 = vpop.f32.mrb[5].mxu1  ;;  %v1178_v29 = vpop.f32.mrb[9].mxu0 }
 0x2e3   :  { %v1157_v30 = vadd.f32 %v1156_v28, %v1155_v25  ;;  %v1179_v31 = vadd.f32 %v1178_v29, %v1177_v26  ;;  %v1158_v32 = vpop.f32.mrb[6].mxu1  ;;  %v1180_v33 = vpop.f32.mrb[10].mxu0 }
 0x2e4   :  { %v1159_v34 = vpop.f32.mrb[7].mxu1  ;;  %v1181_v35 = vpop.f32.mrb[11].mxu0 }
 0x2e5   :  { %v974_v36 = vadd.f32 %v1157_v30, %v1106_v27 }
 0x2e7   :  { %v1014_v37 = vadd.f32 %v1179_v31, %v974_v36 }
 0x2e9   :  { %1019 = vst [vmem:[#allocation10] sm:$0xff] %v1014_v37 }
 0x2ea   :  { %1428 = shalt.err (!%p1425_p8)
}
 0x2eb   :  { %s1429_s12 = scalar_lea.hbm %s1589_s7, 128 }
 0x2ec   :  { %p1430_p9 = scmp.ne.s32.totalorder %s1589_s7, %s1429_s12  ;;  %p1433_p10 = scmp.lt.u32.totalorder %s1429_s12, %s1589_s7 }
 0x2ee   :  { %p1435_p11 = pnand %p1433_p10, %p1430_p9 }
 0x2f0   :  { %1438 = shalt.err (!%p1435_p11)
}
 0x2f1   :  { %1029 = dma.vmem_to_hbm [thread:$0]  %s1027_s9, 128, %s1589_s7, [#allocation4]  }
 0x2f2   :  { %1445 = dma.done.wait [#allocation4], 128  }
 0x2f3   :  { %1446 = vsyncadd [#allocation4], 4294967168 }
 0x2f4   :  { %1033 = vsyncpa [#allocation3], 1 }
 0x2f5   :  { %1034 = vsyncpa [#allocation6], 1 }
 0x2f6   :  { %1035 = vsyncpa [#allocation9], 1 }
 0x2f7   :  { %1036 = vsyncpa [#allocation4], 1 }

// kernel: tpu_custom_call.1
= control target key start
LH: loop header
LB: loop body
LE: loop exit
PB: predicated region body
PF: predicated region fallthrough
CT: control target
= control target key end

     0   :  { %12 = vsyncpa [#allocation3], 0  ;;  %s1582_s0 = inlined_call_operand.hbm [shape: f32[8,32], index: 0, kind: input, shape index: {}]   ;;  %s1583_s1 = inlined_call_operand.hbm [shape: bf16[32,256], index: 1, kind: input, shape index: {}]   ;;  %s1584_s2 = inlined_call_operand.vmem [shape: f32[1,256], index: 2, kind: input, shape index: {}]   ;;  %s1585_s3 = inlined_call_operand.hbm [shape: bf16[256,512], index: 3, kind: input, shape index: {}]   ;;  %s1586_s4 = inlined_call_operand.vmem [shape: f32[1,512], index: 4, kind: input, shape index: {}]   ;;  %s1587_s5 = inlined_call_operand.hbm [shape: bf16[512,128], index: 5, kind: input, shape index: {}]   ;;  %s1588_s6 = inlined_call_operand.vmem [shape: f32[1,128], index: 6, kind: input, shape index: {}]   ;;  %s1589_s7 = inlined_call_operand.hbm [shape: f32[8,128], index: 7, kind: output, shape index: {}]  }
   0x1   :  { %13 = vsyncpa [#allocation6], 0 }
   0x2   :  { %14 = vsyncpa [#allocation9], 0 }
   0x3   :  { %15 = vsyncpa [#allocation4], 0  ;;  %s1447_s24 = smov [#allocation5]   ;;  %s1329_s28 = scalar_lea.hbm %s1583_s1, 512 }
   0x4   :  { %s31_s25 = sshll.u32 %s1447_s24, 4  ;;  %p1330_p0 = scmp.ne.s32.totalorder %s1583_s1, %s1329_s28  ;;  %s32_s25 = int_to_ptr.vmem [resolvable:$true] %s31_s25 }
   0x5   :  { %p1333_p1 = scmp.lt.u32.totalorder %s1329_s28, %s1583_s1 }
   0x7   :  { %p1335_p2 = pnand %p1333_p1, %p1330_p0 }
   0x9   :  { %1338 = shalt.err (!%p1335_p2)
}
   0xa   :  { %s1339_s10 = scalar_lea.vmem %s32_s25, 512  ;;  %p1344_p4 = scmp.lt.s32.totalorder %s32_s25, %s32_s25 }
   0xb   :  { %p1340_p3 = scmp.ne.s32.totalorder %s32_s25, %s1339_s10  ;;  %p1345_p5 = scmp.lt.s32.totalorder %s1339_s10, %s1339_s10 }
   0xd   :  { %p1346_p6 = por %p1345_p5, %p1344_p4 }
   0xf   :  { %p1347_p7 = pnand %p1346_p6, %p1340_p3 }
  0x11   :  { %1350 = shalt.err (!%p1347_p7)
}
  0x12   :  { %s1448_s11 = smov 128   ;;  %s1449_s12 = smov 8  }
  0x13   :  { %37 = dma.hbm_to_vmem [thread:$0]  %s1583_s1, 512, %s32_s25, [#allocation6], %s1448_s11, %s1448_s11, %s1449_s12  }
  0x14   :  { %s1450_s15 = smov [#allocation2]   ;;  %s1451_s17 = smov [#allocation7]  }
  0x15   :  { %s22_s16 = sshll.u32 %s1450_s15, 4  ;;  %s45_s18 = sshll.u32 %s1451_s17, 4  ;;  %s23_s16 = int_to_ptr.vmem [resolvable:$true] %s22_s16  ;;  %s46_s18 = int_to_ptr.vmem [resolvable:$true] %s45_s18 }
  0x16   :  { %s1351_s21 = scalar_lea.hbm %s1582_s0, 128 }
  0x17   :  { %p1352_p8 = scmp.ne.s32.totalorder %s1582_s0, %s1351_s21  ;;  %p1355_p9 = scmp.lt.u32.totalorder %s1351_s21, %s1582_s0 }
  0x19   :  { %p1357_p10 = pnand %p1355_p9, %p1352_p8 }
  0x1b   :  { %1360 = shalt.err (!%p1357_p10)
}
  0x1c   :  { %s1361_s1 = scalar_lea.vmem %s23_s16, 128  ;;  %p1366_p12 = scmp.lt.s32.totalorder %s23_s16, %s23_s16 }
  0x1d   :  { %p1362_p11 = scmp.ne.s32.totalorder %s23_s16, %s1361_s1  ;;  %p1367_p13 = scmp.lt.s32.totalorder %s1361_s1, %s1361_s1 }
  0x1f   :  { %p1368_p0 = por %p1367_p13, %p1366_p12 }
  0x21   :  { %p1369_p1 = pnand %p1368_p0, %p1362_p11 }
  0x23   :  { %1372 = shalt.err (!%p1369_p1)
}
  0x24   :  { %25 = dma.hbm_to_vmem [thread:$0]  %s1582_s0, 128, %s23_s16, [#allocation3]  }
  0x25   :  { %s1373_s30 = scalar_lea.hbm %s1585_s3, 8192 }
  0x26   :  { %p1374_p2 = scmp.ne.s32.totalorder %s1585_s3, %s1373_s30  ;;  %p1377_p3 = scmp.lt.u32.totalorder %s1373_s30, %s1585_s3 }
  0x28   :  { %p1379_p4 = pnand %p1377_p3, %p1374_p2 }
  0x2a   :  { %1382 = shalt.err (!%p1379_p4)
}
  0x2b   :  { %s1383_s12 = scalar_lea.vmem %s46_s18, 8192  ;;  %p1388_p6 = scmp.lt.s32.totalorder %s46_s18, %s46_s18 }
  0x2c   :  { %p1384_p5 = scmp.ne.s32.totalorder %s46_s18, %s1383_s12  ;;  %p1389_p7 = scmp.lt.s32.totalorder %s1383_s12, %s1383_s12 }
  0x2e   :  { %p1390_p8 = por %p1389_p7, %p1388_p6 }
  0x30   :  { %p1391_p9 = pnand %p1390_p8, %p1384_p5 }
  0x32   :  { %1394 = shalt.err (!%p1391_p9)
}
  0x33   :  { %s1452_s0 = smov 256   ;;  %s1453_s13 = smov 16  }
  0x34   :  { %51 = dma.hbm_to_vmem [thread:$0]  %s1585_s3, 8192, %s46_s18, [#allocation6], %s1452_s0, %s1452_s0, %s1453_s13  }
  0x35   :  { %s1454_s16 = smov [#allocation8]   ;;  %s1395_s21 = scalar_lea.hbm %s1587_s5, 4096 }
  0x36   :  { %s59_s17 = sshll.u32 %s1454_s16, 4  ;;  %p1396_p10 = scmp.ne.s32.totalorder %s1587_s5, %s1395_s21  ;;  %s60_s17 = int_to_ptr.vmem [resolvable:$true] %s59_s17 }
  0x37   :  { %p1399_p11 = scmp.lt.u32.totalorder %s1395_s21, %s1587_s5 }
  0x39   :  { %p1401_p12 = pnand %p1399_p11, %p1396_p10 }
  0x3b   :  { %1404 = shalt.err (!%p1401_p12)
}
  0x3c   :  { %s1405_s1 = scalar_lea.vmem %s60_s17, 4096  ;;  %p1410_p0 = scmp.lt.s32.totalorder %s60_s17, %s60_s17 }
  0x3d   :  { %p1406_p13 = scmp.ne.s32.totalorder %s60_s17, %s1405_s1  ;;  %p1411_p1 = scmp.lt.s32.totalorder %s1405_s1, %s1405_s1 }
  0x3f   :  { %p1412_p2 = por %p1411_p1, %p1410_p0 }
  0x41   :  { %p1413_p3 = pnand %p1412_p2, %p1406_p13 }
  0x43   :  { %1416 = shalt.err (!%p1413_p3)
}
  0x44   :  { %s1455_s3 = smov 64   ;;  %s1456_s18 = smov 4  }
  0x45   :  { %65 = dma.hbm_to_vmem [thread:$0]  %s1587_s5, 4096, %s60_s17, [#allocation9], %s1455_s3, %s1455_s3, %s1456_s18  }
  0x46   :  { %1439 = dma.done.wait [#allocation3], 128  }
  0x47   :  { %1440 = vsyncadd [#allocation3], 4294967168 }
  0x48   :  { %1441 = dma.done.wait [#allocation6], 8704  }
  0x49   :  { %1442 = vsyncadd [#allocation6], 4294958592 }
  0x4a   :  { %1443 = dma.done.wait [#allocation9], 4096  }
  0x4b   :  { %1444 = vsyncadd [#allocation9], 4294963200  ;;  %v1457_v0 = vmov 0   ;;  %v1195_v1 = vld [vmem:[#allocation5 + $0x4] ss:$8 sps:$4 sm:$0xff]   ;;  %v81_v5 = vld [vmem:[#allocation2] sm:$0xff] }
  0x4c   :  { %155 = vmatprep.mubr.bf16.mxu0 %v1457_v0  ;;  %v1197_v2 = vld [vmem:[#allocation5] ss:$8 sps:$4 sm:$0xff]   ;;  %123 = vmatprep.subr.bf16.mxu0 %v1195_v1  ;;  %v1198_v3 = vld [vmem:[#allocation5 + $0x14] ss:$8 sps:$4 sm:$0xff]   ;;  %v1200_v4 = vld [vmem:[#allocation5 + $0x10] ss:$8 sps:$4 sm:$0xff]   ;;  %v82_v9 = vpack.c.bf16 %v81_v5, %v81_v5 }
  0x4d   :  { %124 = vmatpush1.bf16.msra.mxu0 %v1197_v2  ;;  %v1201_v6 = vld [vmem:[#allocation7 + $0x4] ss:$16 sps:$4 sm:$0xff]   ;;  %v1205_v7 = vld [vmem:[#allocation7 + $0xc] ss:$16 sps:$4 sm:$0xff]   ;;  %v1206_v8 = vld [vmem:[#allocation7] ss:$16 sps:$4 sm:$0xff]  }
  0x4e   :  { %125 = vmatprep.subr.bf16.mxu0 %v1198_v3  ;;  %578 = vmatprep.subr.bf16.mxu1 %v1201_v6  ;;  %v1207_v10 = vld [vmem:[#allocation7 + $0x24] ss:$16 sps:$4 sm:$0xff]   ;;  %vm119_vm0 = vcmask 261120   ;;  %v1203_v11 = vld [vmem:[#allocation7 + $0x8] ss:$16 sps:$4 sm:$0xff]   ;;  %s1458_s8 = smov [#allocation10]  }
  0x4f   :  { %579 = vmatpush1.bf16.msra.mxu1 %v1206_v8  ;;  %v1211_v12 = vld [vmem:[#allocation7 + $0x2c] ss:$16 sps:$4 sm:$0xff]   ;;  %v1212_v13 = vld [vmem:[#allocation7 + $0x20] ss:$16 sps:$4 sm:$0xff]   ;;  %v1213_v14 = vld [vmem:[#allocation7 + $0x44] ss:$16 sps:$4 sm:$0xff]  }
  0x50   :  { %580 = vmatprep.subr.bf16.mxu1 %v1207_v10  ;;  %v1209_v15 = vld [vmem:[#allocation7 + $0x28] ss:$16 sps:$4 sm:$0xff]   ;;  %v1217_v16 = vld [vmem:[#allocation7 + $0x4c] ss:$16 sps:$4 sm:$0xff]   ;;  %v1218_v17 = vld [vmem:[#allocation7 + $0x40] ss:$16 sps:$4 sm:$0xff]  }
  0x51   :  { %126 = vmatpush1.bf16.msra.mxu0 %v1200_v4  ;;  %v1219_v18 = vld [vmem:[#allocation7 + $0x64] ss:$16 sps:$4 sm:$0xff]   ;;  %v1215_v19 = vld [vmem:[#allocation7 + $0x48] ss:$16 sps:$4 sm:$0xff]   ;;  %v1223_v20 = vld [vmem:[#allocation7 + $0x6c] ss:$16 sps:$4 sm:$0xff]  }
  0x52   :  { %619 = vmatprep.subr.bf16.mxu0 %v1205_v7  ;;  %v1224_v21 = vld [vmem:[#allocation7 + $0x60] ss:$16 sps:$4 sm:$0xff]   ;;  %v1225_v22 = vld [vmem:[#allocation7 + $0x84] ss:$16 sps:$4 sm:$0xff]   ;;  %v1221_v23 = vld [vmem:[#allocation7 + $0x68] ss:$16 sps:$4 sm:$0xff]  }
  0x53   :  { %581 = vmatpush1.bf16.msra.mxu1 %v1212_v13  ;;  %v1229_v24 = vld [vmem:[#allocation7 + $0x8c] ss:$16 sps:$4 sm:$0xff]   ;;  %v1230_v25 = vld [vmem:[#allocation7 + $0x80] ss:$16 sps:$4 sm:$0xff]   ;;  %v1231_v26 = vld [vmem:[#allocation7 + $0xa4] ss:$16 sps:$4 sm:$0xff]  }
  0x54   :  { %1041 = vmatmul.mubr.msk.bf16.vlgmr.msra.gmra.mrb[0].mxu0 %vm119_vm0, %v82_v9  ;;  %582 = vmatprep.subr.bf16.mxu1 %v1213_v14  ;;  %v1227_v27 = vld [vmem:[#allocation7 + $0x88] ss:$16 sps:$4 sm:$0xff]   ;;  %v1235_v28 = vld [vmem:[#allocation7 + $0xac] ss:$16 sps:$4 sm:$0xff]   ;;  %v1236_v29 = vld [vmem:[#allocation7 + $0xa0] ss:$16 sps:$4 sm:$0xff]   ;;  %v89_v9 = vlaneseq }
  0x55   :  { %620 = vmatpush1.bf16.msra.mxu0 %v1203_v11  ;;  %v1237_v30 = vld [vmem:[#allocation7 + $0xc4] ss:$16 sps:$4 sm:$0xff]   ;;  %v1233_v31 = vld [vmem:[#allocation7 + $0xa8] ss:$16 sps:$4 sm:$0xff]   ;;  %v1241_v32 = vld [vmem:[#allocation7 + $0xcc] ss:$16 sps:$4 sm:$0xff]  }
  0x56   :  { %621 = vmatprep.subr.bf16.mxu0 %v1211_v12  ;;  %v1242_v33 = vld [vmem:[#allocation7 + $0xc0] ss:$16 sps:$4 sm:$0xff]   ;;  %v1243_v34 = vld [vmem:[#allocation7 + $0xe4] ss:$16 sps:$4 sm:$0xff]   ;;  %v1239_v35 = vld [vmem:[#allocation7 + $0xc8] ss:$16 sps:$4 sm:$0xff]  }
  0x57   :  { %583 = vmatpush1.bf16.msra.mxu1 %v1218_v17  ;;  %v1247_v36 = vld [vmem:[#allocation7 + $0xec] ss:$16 sps:$4 sm:$0xff]   ;;  %v1248_v37 = vld [vmem:[#allocation7 + $0xe0] ss:$16 sps:$4 sm:$0xff]   ;;  %v1249_v38 = vld [vmem:[#allocation7 + $0x104] ss:$16 sps:$4 sm:$0xff]  }
  0x58   :  { %584 = vmatprep.subr.bf16.mxu1 %v1219_v18  ;;  %v1245_v39 = vld [vmem:[#allocation7 + $0xe8] ss:$16 sps:$4 sm:$0xff]   ;;  %v1253_v40 = vld [vmem:[#allocation7 + $0x10c] ss:$16 sps:$4 sm:$0xff]   ;;  %v1254_v41 = vld [vmem:[#allocation7 + $0x100] ss:$16 sps:$4 sm:$0xff]  }
  0x59   :  { %622 = vmatpush1.bf16.msra.mxu0 %v1209_v15  ;;  %v1255_v42 = vld [vmem:[#allocation7 + $0x124] ss:$16 sps:$4 sm:$0xff]   ;;  %v1251_v43 = vld [vmem:[#allocation7 + $0x108] ss:$16 sps:$4 sm:$0xff]   ;;  %v1260_v44 = vld [vmem:[#allocation7 + $0x120] ss:$16 sps:$4 sm:$0xff]  }
  0x5a   :  { %623 = vmatprep.subr.bf16.mxu0 %v1217_v16  ;;  %v1259_v45 = vld [vmem:[#allocation7 + $0x12c] ss:$16 sps:$4 sm:$0xff]   ;;  %v1261_v46 = vld [vmem:[#allocation7 + $0x144] ss:$16 sps:$4 sm:$0xff]   ;;  %v1257_v47 = vld [vmem:[#allocation7 + $0x128] ss:$16 sps:$4 sm:$0xff]  }
  0x5b   :  { %585 = vmatpush1.bf16.msra.mxu1 %v1224_v21  ;;  %v1266_v48 = vld [vmem:[#allocation7 + $0x140] ss:$16 sps:$4 sm:$0xff]   ;;  %v1265_v49 = vld [vmem:[#allocation7 + $0x14c] ss:$16 sps:$4 sm:$0xff]   ;;  %v1267_v50 = vld [vmem:[#allocation7 + $0x164] ss:$16 sps:$4 sm:$0xff]  }
  0x5c   :  { %586 = vmatprep.subr.bf16.mxu1 %v1225_v22  ;;  %v1263_v51 = vld [vmem:[#allocation7 + $0x148] ss:$16 sps:$4 sm:$0xff]   ;;  %v1272_v52 = vld [vmem:[#allocation7 + $0x160] ss:$16 sps:$4 sm:$0xff]   ;;  %v1271_v53 = vld [vmem:[#allocation7 + $0x16c] ss:$16 sps:$4 sm:$0xff]  }
  0x5d   :  { %624 = vmatpush1.bf16.msra.mxu0 %v1215_v19  ;;  %v1273_v54 = vld [vmem:[#allocation7 + $0x184] ss:$16 sps:$4 sm:$0xff]   ;;  %v1269_v55 = vld [vmem:[#allocation7 + $0x168] ss:$16 sps:$4 sm:$0xff]   ;;  %v1278_v56 = vld [vmem:[#allocation7 + $0x180] ss:$16 sps:$4 sm:$0xff]  }
  0x5e   :  { %625 = vmatprep.subr.bf16.mxu0 %v1223_v20  ;;  %v1277_v57 = vld [vmem:[#allocation7 + $0x18c] ss:$16 sps:$4 sm:$0xff]   ;;  %v1279_v58 = vld [vmem:[#allocation7 + $0x1a4] ss:$16 sps:$4 sm:$0xff]   ;;  %v1275_v59 = vld [vmem:[#allocation7 + $0x188] ss:$16 sps:$4 sm:$0xff]  }
  0x5f   :  { %587 = vmatpush1.bf16.msra.mxu1 %v1230_v25  ;;  %v1284_v60 = vld [vmem:[#allocation7 + $0x1a0] ss:$16 sps:$4 sm:$0xff]   ;;  %v1283_v61 = vld [vmem:[#allocation7 + $0x1ac] ss:$16 sps:$4 sm:$0xff]   ;;  %v1281_v62 = vld [vmem:[#allocation7 + $0x1a8] ss:$16 sps:$4 sm:$0xff]  }
  0x60   :  { %588 = vmatprep.subr.bf16.mxu1 %v1231_v26  ;;  %v1285_v63 = vld [vmem:[#allocation7 + $0x1c4] ss:$16 sps:$4 sm:$0xff]   ;;  %v1289_v0 = vld [vmem:[#allocation7 + $0x1cc] ss:$16 sps:$4 sm:$0xff]   ;;  %v1287_v1 = vld [vmem:[#allocation7 + $0x1c8] ss:$16 sps:$4 sm:$0xff]  }
  0x61   :  { %626 = vmatpush1.bf16.msra.mxu0 %v1221_v23  ;;  %v1290_v2 = vld [vmem:[#allocation7 + $0x1c0] ss:$16 sps:$4 sm:$0xff]   ;;  %v1291_v3 = vld [vmem:[#allocation7 + $0x1e4] ss:$16 sps:$4 sm:$0xff]   ;;  %v1293_v4 = vld [vmem:[#allocation7 + $0x1e8] ss:$16 sps:$4 sm:$0xff]  }
  0x62   :  { %627 = vmatprep.subr.bf16.mxu0 %v1229_v24  ;;  %v1295_v5 = vld [vmem:[#allocation7 + $0x1ec] ss:$16 sps:$4 sm:$0xff]   ;;  %v1296_v6 = vld [vmem:[#allocation7 + $0x1e0] ss:$16 sps:$4 sm:$0xff]   ;;  %v1547_v10 = vshrl.u32 %v89_v9, 7  ;;  %s1026_s9 = sshll.u32 %s1458_s8, 4  ;;  %s1027_s9 = int_to_ptr.vmem [resolvable:$true] %s1026_s9 }
  0x63   :  { %589 = vmatpush1.bf16.msra.mxu1 %v1236_v29  ;;  %v1297_v7 = vld [vmem:[#allocation8 + $0x40] sm:$0xff]   ;;  %v87_v12 = vld [vmem:[%s1584_s2] sm:$0x3]  ;;  %s1417_s10 = scalar_lea.vmem %s1027_s9, 128  ;;  %p1422_p5 = scmp.lt.s32.totalorder %s1027_s9, %s1027_s9 }
  0x64   :  { %590 = vmatprep.subr.bf16.mxu1 %v1237_v30  ;;  %v1298_v8 = vld [vmem:[#allocation8 + $0xc0] sm:$0xff]   ;;  %v91_v11 = vsub.s32 0, %v1547_v10  ;;  %v95_v13 = vsub.s32 1, %v1547_v10  ;;  %v1301_v30 = vld [vmem:[#allocation8 + $0x48] sm:$0xff]   ;;  %p1418_p4 = scmp.ne.s32.totalorder %s1027_s9, %s1417_s10  ;;  %p1423_p6 = scmp.lt.s32.totalorder %s1417_s10, %s1417_s10 }
  0x65   :  { %628 = vmatpush1.bf16.msra.mxu0 %v1227_v27  ;;  %v1299_v27 = vld [vmem:[#allocation8] sm:$0xff]  }
  0x66   :  { %629 = vmatprep.subr.bf16.mxu0 %v1235_v28  ;;  %v92_v14 = vrot.slane %v87_v12, %v91_v11  ;;  %v96_v15 = vrot.slane %v87_v12, %v95_v13  ;;  %v1300_v28 = vld [vmem:[#allocation8 + $0x80] sm:$0xff]   ;;  %p1424_p7 = por %p1423_p6, %p1422_p5 }
  0x67   :  { %591 = vmatpush1.bf16.msra.mxu1 %v1242_v33  ;;  %v1304_v33 = vld [vmem:[#allocation8 + $0x88] sm:$0xff]  }
  0x68   :  { %592 = vmatprep.subr.bf16.mxu1 %v1243_v34  ;;  %v1305_v34 = vld [vmem:[#allocation8 + $0x50] sm:$0xff]   ;;  %p1425_p8 = pnand %p1424_p7, %p1418_p4 }
  0x69   :  { %630 = vmatpush1.bf16.msra.mxu0 %v1233_v31  ;;  %v1302_v31 = vld [vmem:[#allocation8 + $0xc8] sm:$0xff]  }
  0x6a   :  { %631 = vmatprep.subr.bf16.mxu0 %v1241_v32  ;;  %v1303_v32 = vld [vmem:[#allocation8 + $0x8] sm:$0xff]  }
  0x6b   :  { %593 = vmatpush1.bf16.msra.mxu1 %v1248_v37  ;;  %v1308_v37 = vld [vmem:[#allocation8 + $0x90] sm:$0xff]  }
  0x6c   :  { %594 = vmatprep.subr.bf16.mxu1 %v1249_v38  ;;  %v1309_v38 = vld [vmem:[#allocation8 + $0x58] sm:$0xff]  }
  0x6d   :  { %632 = vmatpush1.bf16.msra.mxu0 %v1239_v35  ;;  %v1306_v35 = vld [vmem:[#allocation8 + $0xd0] sm:$0xff]  }
  0x6e   :  { %633 = vmatprep.subr.bf16.mxu0 %v1247_v36  ;;  %v1307_v36 = vld [vmem:[#allocation8 + $0x10] sm:$0xff]  }
  0x6f   :  { %595 = vmatpush1.bf16.msra.mxu1 %v1254_v41  ;;  %v1312_v41 = vld [vmem:[#allocation8 + $0x98] sm:$0xff]  }
  0x70   :  { %596 = vmatprep.subr.bf16.mxu1 %v1255_v42  ;;  %v1313_v42 = vld [vmem:[#allocation8 + $0x60] sm:$0xff]  }
  0x71   :  { %634 = vmatpush1.bf16.msra.mxu0 %v1245_v39  ;;  %v1310_v39 = vld [vmem:[#allocation8 + $0xd8] sm:$0xff]  }
  0x72   :  { %635 = vmatprep.subr.bf16.mxu0 %v1253_v40  ;;  %v1311_v40 = vld [vmem:[#allocation8 + $0x18] sm:$0xff]  }
  0x73   :  { %597 = vmatpush1.bf16.msra.mxu1 %v1260_v44  ;;  %v1315_v44 = vld [vmem:[#allocation8 + $0x20] sm:$0xff]  }
  0x74   :  { %598 = vmatprep.subr.bf16.mxu1 %v1261_v46  ;;  %v1317_v46 = vld [vmem:[#allocation8 + $0x68] sm:$0xff]  }
  0x75   :  { %636 = vmatpush1.bf16.msra.mxu0 %v1251_v43  ;;  %v1314_v43 = vld [vmem:[#allocation8 + $0xe0] sm:$0xff]  }
  0x76   :  { %637 = vmatprep.subr.bf16.mxu0 %v1259_v45  ;;  %v1316_v45 = vld [vmem:[#allocation8 + $0xa0] sm:$0xff]  }
  0x77   :  { %599 = vmatpush1.bf16.msra.mxu1 %v1266_v48  ;;  %v1319_v48 = vld [vmem:[#allocation8 + $0x28] sm:$0xff]  }
  0x78   :  { %600 = vmatprep.subr.bf16.mxu1 %v1267_v50  ;;  %v1321_v50 = vld [vmem:[#allocation8 + $0x70] sm:$0xff]  }
  0x79   :  { %638 = vmatpush1.bf16.msra.mxu0 %v1257_v47  ;;  %v1318_v47 = vld [vmem:[#allocation8 + $0xe8] sm:$0xff]  }
  0x7a   :  { %639 = vmatprep.subr.bf16.mxu0 %v1265_v49  ;;  %v1320_v49 = vld [vmem:[#allocation8 + $0xa8] sm:$0xff]  }
  0x7b   :  { %601 = vmatpush1.bf16.msra.mxu1 %v1272_v52  ;;  %v1323_v52 = vld [vmem:[#allocation8 + $0x30] sm:$0xff]  }
  0x7c   :  { %602 = vmatprep.subr.bf16.mxu1 %v1273_v54  ;;  %v1325_v54 = vld [vmem:[#allocation8 + $0x78] sm:$0xff]  }
  0x7d   :  { %640 = vmatpush1.bf16.msra.mxu0 %v1263_v51  ;;  %v1322_v51 = vld [vmem:[#allocation8 + $0xf0] sm:$0xff]  }
  0x7e   :  { %641 = vmatprep.subr.bf16.mxu0 %v1271_v53  ;;  %v1324_v53 = vld [vmem:[#allocation8 + $0xb0] sm:$0xff]  }
  0x7f   :  { %603 = vmatpush1.bf16.msra.mxu1 %v1278_v56  ;;  %v1327_v56 = vld [vmem:[#allocation8 + $0x38] sm:$0xff]  }
  0x80   :  { %604 = vmatprep.subr.bf16.mxu1 %v1279_v58  ;;  %v248_v58 = vsub.s32 2, %v1547_v10 }
  0x81   :  { %642 = vmatpush1.bf16.msra.mxu0 %v1269_v55  ;;  %v1326_v55 = vld [vmem:[#allocation8 + $0xf8] sm:$0xff]  }
  0x82   :  { %643 = vmatprep.subr.bf16.mxu0 %v1277_v57  ;;  %v1328_v57 = vld [vmem:[#allocation8 + $0xb8] sm:$0xff]  }
  0x83   :  { %605 = vmatpush1.bf16.msra.mxu1 %v1284_v60  ;;  %v252_v60 = vsub.s32 3, %v1547_v10 }
  0x84   :  { %606 = vmatprep.subr.bf16.mxu1 %v1285_v63 }
  0x85   :  { %644 = vmatpush1.bf16.msra.mxu0 %v1275_v59  ;;  %v236_v59 = vld [vmem:[%s1586_s4] sm:$0xf] }
  0x86   :  { %645 = vmatprep.subr.bf16.mxu0 %v1283_v61  ;;  %v241_v61 = vrot.slane %v236_v59, %v91_v11  ;;  %v245_v63 = vrot.slane %v236_v59, %v95_v13 }
  0x87   :  { %607 = vmatpush1.bf16.msra.mxu1 %v1290_v2 }
  0x88   :  { %608 = vmatprep.subr.bf16.mxu1 %v1291_v3 }
  0x89   :  { %646 = vmatpush1.bf16.msra.mxu0 %v1281_v62  ;;  %v249_v62 = vrot.slane %v236_v59, %v248_v58 }
  0x8a   :  { %647 = vmatprep.subr.bf16.mxu0 %v1289_v0  ;;  %v253_v0 = vrot.slane %v236_v59, %v252_v60 }
  0x8b   :  { %609 = vmatpush1.bf16.msra.mxu1 %v1296_v6 }
  0x8c   :  { %1139 = vmatprep.subr.bf16.mxu1 %v1297_v7 }
  0x8d   :  { %648 = vmatpush1.bf16.msra.mxu0 %v1287_v1 }
  0x8e   :  { %649 = vmatprep.subr.bf16.mxu0 %v1295_v5 }
  0x91   :  { %650 = vmatpush1.bf16.msra.mxu0 %v1293_v4 }
  0x92   :  { %1161 = vmatprep.subr.bf16.mxu0 %v1298_v8 }
 0x127   :  { %v157_v16 = vpop.f32.mrb[0].mxu0 }
 0x128   :  { %v158_v17 = vadd.f32 %v157_v16, %v92_v14  ;;  %v159_v18 = vpop.f32.mrb[1].mxu0 }
 0x129   :  { %v160_v19 = vadd.f32 %v159_v18, %v96_v15  ;;  %v161_v20 = vpop.f32.mrb[2].mxu0 }
 0x12a   :  { %vm164_vm1 = vcmp.gt.f32.partialorder %v158_v17, 0.0  ;;  %v166_v21 = vmul.f32 0.2, %v158_v17  ;;  %v162_v22 = vpop.f32.mrb[3].mxu0 }
 0x12b   :  { %v167_v23 = vmul.f32 0.2, %v160_v19  ;;  %vm165_vm2 = vcmp.gt.f32.partialorder %v160_v19, 0.0 }
 0x12c   :  { %v168_v24 = vsel %vm164_vm1, %v158_v17, %v166_v21 }
 0x12d   :  { %v169_v25 = vsel %vm165_vm2, %v160_v19, %v167_v23  ;;  %v170_v29 = vpack.c.bf16 %v168_v24, %v168_v24 }
 0x12e   :  { %v171_v26 = vpack.c.bf16 %v169_v25, %v169_v25 }
 0x130   :  { %610 = vmatprep.mubr.bf16.mxu1 %v171_v26  ;;  %651 = vmatprep.mubr.bf16.mxu0 %v171_v26 }
 0x131   :  { %611 = vmatmul.mubr.bf16.vlgmr.msra.gmra.mrb[0].mxu1 %v170_v29  ;;  %652 = vmatmul.mubr.bf16.vlgmr.msra.gmra.mrb[4].mxu0 %v170_v29 }
 0x132   :  { %1140 = vmatpush3.bf16.msra.mxu1 %v1299_v27  ;;  %1162 = vmatpush3.bf16.msra.mxu0 %v1300_v28  ;;  %v1106_v27 = vld [vmem:[%s1588_s6] ss:$0 sm:$0xff] }
 0x133   :  { %1141 = vmatprep.subr.bf16.mxu1 %v1301_v30  ;;  %1163 = vmatprep.subr.bf16.mxu0 %v1302_v31 }
 0x136   :  { %1142 = vmatpush3.bf16.msra.mxu1 %v1303_v32  ;;  %1164 = vmatpush3.bf16.msra.mxu0 %v1304_v33 }
 0x137   :  { %1143 = vmatprep.subr.bf16.mxu1 %v1305_v34  ;;  %1165 = vmatprep.subr.bf16.mxu0 %v1306_v35 }
 0x13a   :  { %1144 = vmatpush3.bf16.msra.mxu1 %v1307_v36  ;;  %1166 = vmatpush3.bf16.msra.mxu0 %v1308_v37 }
 0x13b   :  { %1145 = vmatprep.subr.bf16.mxu1 %v1309_v38  ;;  %1167 = vmatprep.subr.bf16.mxu0 %v1310_v39 }
 0x13e   :  { %1146 = vmatpush3.bf16.msra.mxu1 %v1311_v40  ;;  %1168 = vmatpush3.bf16.msra.mxu0 %v1312_v41 }
 0x13f   :  { %1147 = vmatprep.subr.bf16.mxu1 %v1313_v42  ;;  %1169 = vmatprep.subr.bf16.mxu0 %v1314_v43 }
 0x142   :  { %1148 = vmatpush3.bf16.msra.mxu1 %v1315_v44  ;;  %1170 = vmatpush3.bf16.msra.mxu0 %v1316_v45 }
 0x143   :  { %1149 = vmatprep.subr.bf16.mxu1 %v1317_v46  ;;  %1171 = vmatprep.subr.bf16.mxu0 %v1318_v47 }
 0x146   :  { %1150 = vmatpush3.bf16.msra.mxu1 %v1319_v48  ;;  %1172 = vmatpush3.bf16.msra.mxu0 %v1320_v49 }
 0x147   :  { %1151 = vmatprep.subr.bf16.mxu1 %v1321_v50  ;;  %1173 = vmatprep.subr.bf16.mxu0 %v1322_v51 }
 0x14a   :  { %1152 = vmatpush3.bf16.msra.mxu1 %v1323_v52  ;;  %1174 = vmatpush3.bf16.msra.mxu0 %v1324_v53 }
 0x14b   :  { %1153 = vmatprep.subr.bf16.mxu1 %v1325_v54  ;;  %1175 = vmatprep.subr.bf16.mxu0 %v1326_v55 }
 0x14e   :  { %1154 = vmatpush3.bf16.msra.mxu1 %v1327_v56  ;;  %1176 = vmatpush3.bf16.msra.mxu0 %v1328_v57 }
 0x204   :  { %v612_v1 = vpop.f32.mrb[0].mxu1  ;;  %v653_v2 = vpop.f32.mrb[4].mxu0 }
 0x205   :  { %v613_v3 = vadd.f32 %v612_v1, %v241_v61  ;;  %v654_v4 = vadd.f32 %v653_v2, %v249_v62  ;;  %v614_v5 = vpop.f32.mrb[1].mxu1  ;;  %v655_v6 = vpop.f32.mrb[5].mxu0 }
 0x206   :  { %v615_v7 = vadd.f32 %v614_v5, %v245_v63  ;;  %v656_v8 = vadd.f32 %v655_v6, %v253_v0  ;;  %v616_v9 = vpop.f32.mrb[2].mxu1  ;;  %v657_v12 = vpop.f32.mrb[6].mxu0 }
 0x207   :  { %vm660_vm3 = vcmp.gt.f32.partialorder %v613_v3, 0.0  ;;  %v664_v14 = vmul.f32 0.2, %v613_v3  ;;  %vm662_vm4 = vcmp.gt.f32.partialorder %v654_v4, 0.0  ;;  %v666_v15 = vmul.f32 0.2, %v654_v4 }
 0x208   :  { %vm661_vm5 = vcmp.gt.f32.partialorder %v615_v7, 0.0  ;;  %v665_v11 = vmul.f32 0.2, %v615_v7  ;;  %vm663_vm6 = vcmp.gt.f32.partialorder %v656_v8, 0.0  ;;  %v667_v10 = vmul.f32 0.2, %v656_v8 }
 0x209   :  { %v668_v13 = vsel %vm660_vm3, %v613_v3, %v664_v14  ;;  %v670_v16 = vsel %vm662_vm4, %v654_v4, %v666_v15  ;;  %v617_v17 = vpop.f32.mrb[3].mxu1  ;;  %v658_v18 = vpop.f32.mrb[7].mxu0 }
 0x20a   :  { %v669_v19 = vsel %vm661_vm5, %v615_v7, %v665_v11  ;;  %v671_v20 = vsel %vm663_vm6, %v656_v8, %v667_v10  ;;  %v672_v23 = vpack.c.bf16 %v668_v13, %v668_v13  ;;  %v674_v24 = vpack.c.bf16 %v670_v16, %v670_v16 }
 0x20b   :  { %v673_v21 = vpack.c.bf16 %v669_v19, %v669_v19  ;;  %v675_v22 = vpack.c.bf16 %v671_v20, %v671_v20 }
 0x20d   :  { %971 = vmatprep.mubr.bf16.mxu1 %v673_v21  ;;  %1011 = vmatprep.mubr.bf16.mxu0 %v675_v22 }
 0x20e   :  { %972 = vmatmul.mubr.bf16.vlgmr.msra.gmra.mrb[4].mxu1 %v672_v23  ;;  %1012 = vmatmul.mubr.bf16.vlgmr.msra.gmra.mrb[8].mxu0 %v674_v24 }
 0x2e1   :  { %v1155_v25 = vpop.f32.mrb[4].mxu1  ;;  %v1177_v26 = vpop.f32.mrb[8].mxu0 }
 0x2e2   :  { %v1156_v28 = vpop.f32.mrb[5].mxu1  ;;  %v1178_v29 = vpop.f32.mrb[9].mxu0 }
 0x2e3   :  { %v1157_v30 = vadd.f32 %v1156_v28, %v1155_v25  ;;  %v1179_v31 = vadd.f32 %v1178_v29, %v1177_v26  ;;  %v1158_v32 = vpop.f32.mrb[6].mxu1  ;;  %v1180_v33 = vpop.f32.mrb[10].mxu0 }
 0x2e4   :  { %v1159_v34 = vpop.f32.mrb[7].mxu1  ;;  %v1181_v35 = vpop.f32.mrb[11].mxu0 }
 0x2e5   :  { %v974_v36 = vadd.f32 %v1157_v30, %v1106_v27 }
 0x2e7   :  { %v1014_v37 = vadd.f32 %v1179_v31, %v974_v36 }
 0x2e9   :  { %1019 = vst [vmem:[#allocation10] sm:$0xff] %v1014_v37 }
 0x2ea   :  { %1428 = shalt.err (!%p1425_p8)
}
 0x2eb   :  { %s1429_s12 = scalar_lea.hbm %s1589_s7, 128 }
 0x2ec   :  { %p1430_p9 = scmp.ne.s32.totalorder %s1589_s7, %s1429_s12  ;;  %p1433_p10 = scmp.lt.u32.totalorder %s1429_s12, %s1589_s7 }
 0x2ee   :  { %p1435_p11 = pnand %p1433_p10, %p1430_p9 }
 0x2f0   :  { %1438 = shalt.err (!%p1435_p11)
}
 0x2f1   :  { %1029 = dma.vmem_to_hbm [thread:$0]  %s1027_s9, 128, %s1589_s7, [#allocation4]  }
 0x2f2   :  { %1445 = dma.done.wait [#allocation4], 128  }
 0x2f3   :  { %1446 = vsyncadd [#allocation4], 4294967168 }
 0x2f4   :  { %1033 = vsyncpa [#allocation3], 1 }
 0x2f5   :  { %1034 = vsyncpa [#allocation6], 1 }
 0x2f6   :  { %1035 = vsyncpa [#allocation9], 1 }
 0x2f7   :  { %1036 = vsyncpa [#allocation4], 1 }

</bundles_post_ra>
